<compile_context>
chip_gen: v6e
topology: v6e:2x2x1
jax: 0.10.0
libtpu: 0.0.40
codegen_flags: <defaults>
</compile_context>

<pallas_src>
import jax
import jax.numpy as jnp
from jax import lax
from jax.experimental import pallas as pl
from jax.experimental.pallas import tpu as pltpu


# ----------------------------------------------------------------------------
# Host-side, ONE-TIME parameter lowering (review item: pre-baked layouts).
# ----------------------------------------------------------------------------
def _lower_conv(weight, stride, pad, hi, wi):
    """Lower a torch Conv2d weight (Cout, Cin, k, k) into
         S : (k, Ho, Hi)          0/1 row-selection matrices
         M : (k, Cin*Wi, Cout*Wo) lowered weight matrices
       such that, with X laid out as x2d[h, ci*Wi + w] = x[ci, h, w],
         Y[ho, co*Wo + wo] = sum_kh (S[kh] @ X) @ M[kh]
       equals the zero-padded, strided torch conv output in the same layout."""
    cout, cin, k, _ = weight.shape
    ho = (hi + 2 * pad - k) // stride + 1
    wo = (wi + 2 * pad - k) // stride + 1

    # Row selection (H axis): S[kh, ho, h] = 1 iff h == stride*ho + kh - pad.
    h_idx = jnp.arange(hi)
    ho_idx = jnp.arange(ho)
    kh_idx = jnp.arange(k)
    sel = (h_idx[None, None, :] ==
           (stride * ho_idx[None, :, None] + kh_idx[:, None, None] - pad))
    sel = sel.astype(jnp.bfloat16)                                   # (k, Ho, Hi)

    # Lowered weights (W axis): M[kh, ci*Wi+w, co*Wo+wo] =
    #   weight[co, ci, kh, w - stride*wo + pad] if that tap index is in [0, k).
    w_idx = jnp.arange(wi)
    wo_idx = jnp.arange(wo)
    kw = w_idx[:, None] - stride * wo_idx[None, :] + pad             # (Wi, Wo)
    valid = ((kw >= 0) & (kw < k)).astype(weight.dtype)
    kw_safe = jnp.clip(kw, 0, k - 1)
    g = weight[:, :, :, kw_safe] * valid[None, None, None]           # (Cout,Cin,k,Wi,Wo)
    m = jnp.transpose(g, (2, 1, 3, 0, 4)).reshape(k, cin * wi, cout * wo)
    return sel, m.astype(jnp.bfloat16), ho, wo, cout


def prepare_params(params, in_hw=28):
    """Call ONCE (outside the jitted forward).  Returns MXU-ready matrices."""
    s1, m1, h1o, w1o, c1 = _lower_conv(params["conv1_w"], 1, 2, in_hw, in_hw)
    s2, m2, h2o, w2o, c2 = _lower_conv(params["conv2_w"], 2, 2, h1o, w1o)
    s3, m3, h3o, w3o, c3 = _lower_conv(params["conv3_w"], 2, 2, h2o, w2o)

    # conv_1 bias, broadcast over the (co, wo) lane layout.
    b1row = jnp.repeat(params["conv1_b"], w1o).reshape(1, c1 * w1o)
    b1row = b1row.astype(jnp.float32)

    # lin_1 (no bias): permute its columns so it contracts directly against the
    # kernel's (ho, co*W3o + wo) activation layout (torch flatten is co,ho,wo).
    lin1_w = params["lin1_w"]                              # (H1, C3*7*7)
    hid = lin1_w.shape[0]
    w1p = jnp.transpose(lin1_w.reshape(hid, c3, h3o, w3o), (2, 1, 3, 0))
    w1p = w1p.reshape(h3o, c3 * w3o, hid).astype(jnp.bfloat16)   # (7, 224, H1)

    w2p = params["lin2_w"].T.astype(jnp.bfloat16)          # (H1, 1)
    b2 = params["lin2_b"].reshape(1, 1).astype(jnp.float32)

    return dict(s1=s1, m1=m1, b1=b1row, s2=s2, m2=m2, s3=s3, m3=m3,
                w1=w1p, w2=w2p, b2=b2)


# ----------------------------------------------------------------------------
# The single fused Pallas kernel (one batch sample per grid step).
# ----------------------------------------------------------------------------
def _fused_disc_kernel(x_ref, s1_ref, m1_ref, b1_ref, s2_ref, m2_ref,
                       s3_ref, m3_ref, w1_ref, w2_ref, b2_ref,
                       out_ref, disl_ref):
    f32, bf16 = jnp.float32, jnp.bfloat16

    def conv(x2d, s_ref, m_ref, bias=None, relu=True):
        k, ho, _ = s_ref.shape
        ncols = m_ref.shape[2]
        acc = jnp.zeros((ho, ncols), f32)
        for kh in range(k):                    # unrolled: 2 tiny MXU ops / tap
            rows = jnp.dot(s_ref[kh], x2d, preferred_element_type=f32)
            acc = acc + jnp.dot(rows.astype(bf16), m_ref[kh],
                                preferred_element_type=f32)
        if bias is not None:
            acc = acc + bias                   # (1, Cout*Wo) broadcast, f32
        if relu:
            acc = jnp.maximum(acc, 0.0)
        return acc

    # Activations stay in vregs/VMEM for the whole forward.
    x0 = x_ref[...].astype(bf16)                                   # (28, Cin*28)
    a1 = conv(x0, s1_ref, m1_ref, bias=b1_ref[...]).astype(bf16)   # (28, (h/2)*28)
    a2 = conv(a1, s2_ref, m2_ref).astype(bf16)                     # (14, 2h*14)
    y3 = conv(a2, s3_ref, m3_ref, relu=False)                      # (7, 4h*7) f32

    disl_ref[...] = y3.astype(disl_ref.dtype)                      # dis_l (pre-ReLU)

    # Head: ReLU -> lin_1 (no bias) -> ReLU -> lin_2, all in-register.
    a3 = jnp.maximum(y3, 0.0).astype(bf16)                         # (7, 4h*7)
    nrow, _, hid = w1_ref.shape
    h = jnp.zeros((1, hid), f32)
    for r in range(nrow):                      # lin_1 as 7 (1,224)x(224,H1) matmuls
        h = h + jnp.dot(a3[r:r + 1, :], w1_ref[r], preferred_element_type=f32)
    h = jnp.maximum(h, 0.0).astype(bf16)
    o = jnp.dot(h, w2_ref[...], preferred_element_type=f32) + b2_ref[...]
    out_ref[...] = o.astype(out_ref.dtype)


# ----------------------------------------------------------------------------
# Forward pass (use_bn=False, dropout=0.0 — the module defaults).
# ----------------------------------------------------------------------------
def vaegan_discriminator28_forward(prepped, x):
    n, cin, hh, ww = x.shape
    # (N,Cin,H,W) -> (N,H,Cin*W): a no-op reshape for Cin==1, tiny otherwise.
    x2d = jnp.transpose(x, (0, 2, 1, 3)).reshape(n, hh, cin * ww)

    s1, m1, b1 = prepped["s1"], prepped["m1"], prepped["b1"]
    s2, m2 = prepped["s2"], prepped["m2"]
    s3, m3 = prepped["s3"], prepped["m3"]
    w1, w2, b2 = prepped["w1"], prepped["w2"], prepped["b2"]

    h3o = s3.shape[1]            # 7
    d3 = m3.shape[2]             # C3 * W3o
    w3o = h3o                    # square spatial (28x28 module)
    c3 = d3 // w3o

    def full3(a):
        return pl.BlockSpec(a.shape, lambda nn: (0, 0, 0))

    def full2(a):
        return pl.BlockSpec(a.shape, lambda nn: (0, 0))

    out, disl_raw = pl.pallas_call(
        _fused_disc_kernel,
        out_shape=(
            jax.ShapeDtypeStruct((n, 1, 1), jnp.float32),
            jax.ShapeDtypeStruct((n, h3o, d3), jnp.float32),
        ),
        grid=(n,),
        in_specs=[
            pl.BlockSpec((None, hh, cin * ww), lambda nn: (nn, 0, 0)),
            full3(s1), full3(m1), full2(b1),
            full3(s2), full3(m2),
            full3(s3), full3(m3),
            full3(w1), full2(w2), full2(b2),
        ],
        out_specs=(
            pl.BlockSpec((None, 1, 1), lambda nn: (nn, 0, 0)),
            pl.BlockSpec((None, h3o, d3), lambda nn: (nn, 0, 0)),
        ),
        compiler_params=pltpu.CompilerParams(
            dimension_semantics=("parallel",)),
    )(x2d, s1, m1, b1, s2, m2, s3, m3, w1, w2, b2)

    # Relay dis_l to torch NCHW: (N,7,C3*7) -> (N,C3,7,7).  Tiny XLA op.
    dis_l = disl_raw.reshape(n, h3o, c3, w3o).transpose(0, 2, 1, 3)
    return out.reshape(n, 1), dis_l


# ----------------------------------------------------------------------------
# Deterministic synthetic parameters (torch-style shapes) + pure-XLA reference.
# ----------------------------------------------------------------------------
def init_params(key, h_size, n_channels):
    ks = jax.random.split(key, 7)
    s = 0.05
    return {
        "conv1_w": s * jax.random.normal(ks[0], (h_size // 2, n_channels, 5, 5), jnp.float32),
        "conv1_b": s * jax.random.normal(ks[1], (h_size // 2,), jnp.float32),
        "conv2_w": s * jax.random.normal(ks[2], (h_size * 2, h_size // 2, 5, 5), jnp.float32),
        "conv3_w": s * jax.random.normal(ks[3], (h_size * 4, h_size * 2, 5, 5), jnp.float32),
        "lin1_w": s * jax.random.normal(ks[4], (h_size * 8, 7 * 7 * h_size * 4), jnp.float32),
        "lin2_w": s * jax.random.normal(ks[5], (1, h_size * 8), jnp.float32),
        "lin2_b": s * jax.random.normal(ks[6], (1,), jnp.float32),
    }


def reference_forward(params, x):
    dn = ("NCHW", "OIHW", "NCHW")
    y = lax.conv_general_dilated(x, params["conv1_w"], (1, 1),
                                 [(2, 2), (2, 2)], dimension_numbers=dn)
    y = jax.nn.relu(y + params["conv1_b"].reshape(1, -1, 1, 1))
    y = lax.conv_general_dilated(y, params["conv2_w"], (2, 2),
                                 [(2, 2), (2, 2)], dimension_numbers=dn)
    y = jax.nn.relu(y)
    y = lax.conv_general_dilated(y, params["conv3_w"], (2, 2),
                                 [(2, 2), (2, 2)], dimension_numbers=dn)
    dis_l = y
    z = jax.nn.relu(y).reshape(y.shape[0], -1)
    z = z @ params["lin1_w"].T
    z = jax.nn.relu(z)
    z = z @ params["lin2_w"].T + params["lin2_b"]
    return z, dis_l


def _assert_close(name, got, want, rel=0.08, abs_=1e-2):
    got = jnp.asarray(got, jnp.float32)
    want = jnp.asarray(want, jnp.float32)
    err = float(jnp.max(jnp.abs(got - want)))
    scale = float(jnp.max(jnp.abs(want)))
    if not err <= rel * scale + abs_:
        raise AssertionError(f"{name}: max|diff|={err:.4e} scale={scale:.4e}")


if __name__ == "__main__":
    h_size = 8
    n_channels = 1
    batch = 2

    key = jax.random.PRNGKey(0)
    k_params, k_x = jax.random.split(key)
    params = init_params(k_params, h_size, n_channels)

    # 28x28 input is required by the 7*7*4h flatten in the module.
    x = jax.random.normal(k_x, (batch, n_channels, 28, 28), jnp.float32)

    prepped = prepare_params(params)            # one-time weight lowering
    fwd = jax.jit(vaegan_discriminator28_forward)
    out, dis_l = fwd(prepped, x)
    jax.block_until_ready((out, dis_l))

    assert out.shape == (batch, 1) and out.dtype == jnp.float32
    assert dis_l.shape == (batch, h_size * 4, 7, 7) and dis_l.dtype == jnp.float32

    # Correctness vs a pure-XLA f32 reference (bf16 MXU -> loose tolerance).
    out_ref, disl_ref = reference_forward(params, x)
    _assert_close("dis_l", dis_l, disl_ref)
    _assert_close("out", out, out_ref)
    print("KERNEL_OK")
</pallas_src>

<mosaic_0001>
module attributes {stable_mosaic.version = 11 : i64} {
  func.func @_fused_disc_kernel(%arg0: i32, %arg1: memref<1x28x28xf32, #tpu.memory_space<vmem>>, %arg2: memref<5x28x28xbf16, #tpu.memory_space<vmem>>, %arg3: memref<5x28x112xbf16, #tpu.memory_space<vmem>>, %arg4: memref<1x112xf32, #tpu.memory_space<vmem>>, %arg5: memref<5x14x28xbf16, #tpu.memory_space<vmem>>, %arg6: memref<5x112x224xbf16, #tpu.memory_space<vmem>>, %arg7: memref<5x7x14xbf16, #tpu.memory_space<vmem>>, %arg8: memref<5x224x224xbf16, #tpu.memory_space<vmem>>, %arg9: memref<7x224x64xbf16, #tpu.memory_space<vmem>>, %arg10: memref<64x1xbf16, #tpu.memory_space<vmem>>, %arg11: memref<1x1xf32, #tpu.memory_space<vmem>>, %arg12: memref<1x1x1xf32, #tpu.memory_space<vmem>>, %arg13: memref<1x7x224xf32, #tpu.memory_space<vmem>>) attributes {dimension_semantics = [#tpu.dimension_semantics<parallel>], iteration_bounds = array<i64: 2>, scalar_prefetch = 0 : i64, scratch_operands = 0 : i64, tpu.core_type = #tpu.core_type<tc>, window_params = [{transform_indices = @transform_0, window_bounds = array<i64: 1, 28, 28>}, {pipeline_mode = #tpu.pipeline_mode<synchronous>, transform_indices = @transform_1, window_bounds = array<i64: 5, 28, 28>}, {pipeline_mode = #tpu.pipeline_mode<synchronous>, transform_indices = @transform_2, window_bounds = array<i64: 5, 28, 112>}, {pipeline_mode = #tpu.pipeline_mode<synchronous>, transform_indices = @transform_3, window_bounds = array<i64: 1, 112>}, {pipeline_mode = #tpu.pipeline_mode<synchronous>, transform_indices = @transform_4, window_bounds = array<i64: 5, 14, 28>}, {pipeline_mode = #tpu.pipeline_mode<synchronous>, transform_indices = @transform_5, window_bounds = array<i64: 5, 112, 224>}, {pipeline_mode = #tpu.pipeline_mode<synchronous>, transform_indices = @transform_6, window_bounds = array<i64: 5, 7, 14>}, {pipeline_mode = #tpu.pipeline_mode<synchronous>, transform_indices = @transform_7, window_bounds = array<i64: 5, 224, 224>}, {pipeline_mode = #tpu.pipeline_mode<synchronous>, transform_indices = @transform_8, window_bounds = array<i64: 7, 224, 64>}, {pipeline_mode = #tpu.pipeline_mode<synchronous>, transform_indices = @transform_9, window_bounds = array<i64: 64, 1>}, {pipeline_mode = #tpu.pipeline_mode<synchronous>, transform_indices = @transform_10, window_bounds = array<i64: 1, 1>}, {transform_indices = @transform_11, window_bounds = array<i64: 1, 1, 1>}, {transform_indices = @transform_12, window_bounds = array<i64: 1, 7, 224>}]} {
    %c0 = arith.constant 0 : index
    %c0_0 = arith.constant 0 : index
    %c0_1 = arith.constant 0 : index
    %0 = vector.load %arg1[%c0, %c0_0, %c0_1] : memref<1x28x28xf32, #tpu.memory_space<vmem>>, vector<1x28x28xf32>
    %1 = vector.shape_cast %0 : vector<1x28x28xf32> to vector<28x28xf32>
    %2 = arith.truncf %1 : vector<28x28xf32> to vector<28x28xbf16>
    %c0_2 = arith.constant 0 : index
    %c0_3 = arith.constant 0 : index
    %3 = vector.load %arg4[%c0_2, %c0_3] : memref<1x112xf32, #tpu.memory_space<vmem>>, vector<1x112xf32>
    %cst = arith.constant 0.000000e+00 : f32
    %4 = vector.broadcast %cst : f32 to vector<28x112xf32>
    %c0_4 = arith.constant 0 : index
    %c0_5 = arith.constant 0 : index
    %c0_6 = arith.constant 0 : index
    %5 = vector.load %arg2[%c0_4, %c0_5, %c0_6] : memref<5x28x28xbf16, #tpu.memory_space<vmem>>, vector<1x28x28xbf16>
    %6 = vector.shape_cast %5 : vector<1x28x28xbf16> to vector<28x28xbf16>
    %cst_7 = arith.constant dense<0.000000e+00> : vector<28x28xf32>
    %7 = tpu.matmul %6, %2, %cst_7 {dimension_numbers = #tpu.dot_dimension_numbers<[1], [0], [0], [1], [0, 0, 1, 1], [], []>} : vector<28x28xbf16>, vector<28x28xbf16>, vector<28x28xf32> -> vector<28x28xf32>
    %8 = arith.truncf %7 : vector<28x28xf32> to vector<28x28xbf16>
    %c0_8 = arith.constant 0 : index
    %c0_9 = arith.constant 0 : index
    %c0_10 = arith.constant 0 : index
    %9 = vector.load %arg3[%c0_8, %c0_9, %c0_10] : memref<5x28x112xbf16, #tpu.memory_space<vmem>>, vector<1x28x112xbf16>
    %10 = vector.shape_cast %9 : vector<1x28x112xbf16> to vector<28x112xbf16>
    %cst_11 = arith.constant dense<0.000000e+00> : vector<28x112xf32>
    %11 = tpu.matmul %8, %10, %cst_11 {dimension_numbers = #tpu.dot_dimension_numbers<[1], [0], [0], [1], [0, 0, 1, 1], [], []>} : vector<28x28xbf16>, vector<28x112xbf16>, vector<28x112xf32> -> vector<28x112xf32>
    %12 = arith.addf %4, %11 : vector<28x112xf32>
    %c1 = arith.constant 1 : index
    %c0_12 = arith.constant 0 : index
    %c0_13 = arith.constant 0 : index
    %13 = vector.load %arg2[%c1, %c0_12, %c0_13] : memref<5x28x28xbf16, #tpu.memory_space<vmem>>, vector<1x28x28xbf16>
    %14 = vector.shape_cast %13 : vector<1x28x28xbf16> to vector<28x28xbf16>
    %cst_14 = arith.constant dense<0.000000e+00> : vector<28x28xf32>
    %15 = tpu.matmul %14, %2, %cst_14 {dimension_numbers = #tpu.dot_dimension_numbers<[1], [0], [0], [1], [0, 0, 1, 1], [], []>} : vector<28x28xbf16>, vector<28x28xbf16>, vector<28x28xf32> -> vector<28x28xf32>
    %16 = arith.truncf %15 : vector<28x28xf32> to vector<28x28xbf16>
    %c1_15 = arith.constant 1 : index
    %c0_16 = arith.constant 0 : index
    %c0_17 = arith.constant 0 : index
    %17 = vector.load %arg3[%c1_15, %c0_16, %c0_17] : memref<5x28x112xbf16, #tpu.memory_space<vmem>>, vector<1x28x112xbf16>
    %18 = vector.shape_cast %17 : vector<1x28x112xbf16> to vector<28x112xbf16>
    %cst_18 = arith.constant dense<0.000000e+00> : vector<28x112xf32>
    %19 = tpu.matmul %16, %18, %cst_18 {dimension_numbers = #tpu.dot_dimension_numbers<[1], [0], [0], [1], [0, 0, 1, 1], [], []>} : vector<28x28xbf16>, vector<28x112xbf16>, vector<28x112xf32> -> vector<28x112xf32>
    %20 = arith.addf %12, %19 : vector<28x112xf32>
    %c2 = arith.constant 2 : index
    %c0_19 = arith.constant 0 : index
    %c0_20 = arith.constant 0 : index
    %21 = vector.load %arg2[%c2, %c0_19, %c0_20] : memref<5x28x28xbf16, #tpu.memory_space<vmem>>, vector<1x28x28xbf16>
    %22 = vector.shape_cast %21 : vector<1x28x28xbf16> to vector<28x28xbf16>
    %cst_21 = arith.constant dense<0.000000e+00> : vector<28x28xf32>
    %23 = tpu.matmul %22, %2, %cst_21 {dimension_numbers = #tpu.dot_dimension_numbers<[1], [0], [0], [1], [0, 0, 1, 1], [], []>} : vector<28x28xbf16>, vector<28x28xbf16>, vector<28x28xf32> -> vector<28x28xf32>
    %24 = arith.truncf %23 : vector<28x28xf32> to vector<28x28xbf16>
    %c2_22 = arith.constant 2 : index
    %c0_23 = arith.constant 0 : index
    %c0_24 = arith.constant 0 : index
    %25 = vector.load %arg3[%c2_22, %c0_23, %c0_24] : memref<5x28x112xbf16, #tpu.memory_space<vmem>>, vector<1x28x112xbf16>
    %26 = vector.shape_cast %25 : vector<1x28x112xbf16> to vector<28x112xbf16>
    %cst_25 = arith.constant dense<0.000000e+00> : vector<28x112xf32>
    %27 = tpu.matmul %24, %26, %cst_25 {dimension_numbers = #tpu.dot_dimension_numbers<[1], [0], [0], [1], [0, 0, 1, 1], [], []>} : vector<28x28xbf16>, vector<28x112xbf16>, vector<28x112xf32> -> vector<28x112xf32>
    %28 = arith.addf %20, %27 : vector<28x112xf32>
    %c3 = arith.constant 3 : index
    %c0_26 = arith.constant 0 : index
    %c0_27 = arith.constant 0 : index
    %29 = vector.load %arg2[%c3, %c0_26, %c0_27] : memref<5x28x28xbf16, #tpu.memory_space<vmem>>, vector<1x28x28xbf16>
    %30 = vector.shape_cast %29 : vector<1x28x28xbf16> to vector<28x28xbf16>
    %cst_28 = arith.constant dense<0.000000e+00> : vector<28x28xf32>
    %31 = tpu.matmul %30, %2, %cst_28 {dimension_numbers = #tpu.dot_dimension_numbers<[1], [0], [0], [1], [0, 0, 1, 1], [], []>} : vector<28x28xbf16>, vector<28x28xbf16>, vector<28x28xf32> -> vector<28x28xf32>
    %32 = arith.truncf %31 : vector<28x28xf32> to vector<28x28xbf16>
    %c3_29 = arith.constant 3 : index
    %c0_30 = arith.constant 0 : index
    %c0_31 = arith.constant 0 : index
    %33 = vector.load %arg3[%c3_29, %c0_30, %c0_31] : memref<5x28x112xbf16, #tpu.memory_space<vmem>>, vector<1x28x112xbf16>
    %34 = vector.shape_cast %33 : vector<1x28x112xbf16> to vector<28x112xbf16>
    %cst_32 = arith.constant dense<0.000000e+00> : vector<28x112xf32>
    %35 = tpu.matmul %32, %34, %cst_32 {dimension_numbers = #tpu.dot_dimension_numbers<[1], [0], [0], [1], [0, 0, 1, 1], [], []>} : vector<28x28xbf16>, vector<28x112xbf16>, vector<28x112xf32> -> vector<28x112xf32>
    %36 = arith.addf %28, %35 : vector<28x112xf32>
    %c4 = arith.constant 4 : index
    %c0_33 = arith.constant 0 : index
    %c0_34 = arith.constant 0 : index
    %37 = vector.load %arg2[%c4, %c0_33, %c0_34] : memref<5x28x28xbf16, #tpu.memory_space<vmem>>, vector<1x28x28xbf16>
    %38 = vector.shape_cast %37 : vector<1x28x28xbf16> to vector<28x28xbf16>
    %cst_35 = arith.constant dense<0.000000e+00> : vector<28x28xf32>
    %39 = tpu.matmul %38, %2, %cst_35 {dimension_numbers = #tpu.dot_dimension_numbers<[1], [0], [0], [1], [0, 0, 1, 1], [], []>} : vector<28x28xbf16>, vector<28x28xbf16>, vector<28x28xf32> -> vector<28x28xf32>
    %40 = arith.truncf %39 : vector<28x28xf32> to vector<28x28xbf16>
    %c4_36 = arith.constant 4 : index
    %c0_37 = arith.constant 0 : index
    %c0_38 = arith.constant 0 : index
    %41 = vector.load %arg3[%c4_36, %c0_37, %c0_38] : memref<5x28x112xbf16, #tpu.memory_space<vmem>>, vector<1x28x112xbf16>
    %42 = vector.shape_cast %41 : vector<1x28x112xbf16> to vector<28x112xbf16>
    %cst_39 = arith.constant dense<0.000000e+00> : vector<28x112xf32>
    %43 = tpu.matmul %40, %42, %cst_39 {dimension_numbers = #tpu.dot_dimension_numbers<[1], [0], [0], [1], [0, 0, 1, 1], [], []>} : vector<28x28xbf16>, vector<28x112xbf16>, vector<28x112xf32> -> vector<28x112xf32>
    %44 = arith.addf %36, %43 : vector<28x112xf32>
    %45 = vector.broadcast %3 : vector<1x112xf32> to vector<28x112xf32>
    %46 = arith.addf %44, %45 : vector<28x112xf32>
    %cst_40 = arith.constant 0.000000e+00 : f32
    %47 = vector.broadcast %cst_40 : f32 to vector<28x112xf32>
    %48 = arith.maximumf %46, %47 : vector<28x112xf32>
    %49 = arith.truncf %48 : vector<28x112xf32> to vector<28x112xbf16>
    %cst_41 = arith.constant 0.000000e+00 : f32
    %50 = vector.broadcast %cst_41 : f32 to vector<14x224xf32>
    %c0_42 = arith.constant 0 : index
    %c0_43 = arith.constant 0 : index
    %c0_44 = arith.constant 0 : index
    %51 = vector.load %arg5[%c0_42, %c0_43, %c0_44] : memref<5x14x28xbf16, #tpu.memory_space<vmem>>, vector<1x14x28xbf16>
    %52 = vector.shape_cast %51 : vector<1x14x28xbf16> to vector<14x28xbf16>
    %cst_45 = arith.constant dense<0.000000e+00> : vector<14x112xf32>
    %53 = tpu.matmul %52, %49, %cst_45 {dimension_numbers = #tpu.dot_dimension_numbers<[1], [0], [0], [1], [0, 0, 1, 1], [], []>} : vector<14x28xbf16>, vector<28x112xbf16>, vector<14x112xf32> -> vector<14x112xf32>
    %54 = arith.truncf %53 : vector<14x112xf32> to vector<14x112xbf16>
    %c0_46 = arith.constant 0 : index
    %c0_47 = arith.constant 0 : index
    %c0_48 = arith.constant 0 : index
    %55 = vector.load %arg6[%c0_46, %c0_47, %c0_48] : memref<5x112x224xbf16, #tpu.memory_space<vmem>>, vector<1x112x224xbf16>
    %56 = vector.shape_cast %55 : vector<1x112x224xbf16> to vector<112x224xbf16>
    %cst_49 = arith.constant dense<0.000000e+00> : vector<14x224xf32>
    %57 = tpu.matmul %54, %56, %cst_49 {dimension_numbers = #tpu.dot_dimension_numbers<[1], [0], [0], [1], [0, 0, 1, 1], [], []>} : vector<14x112xbf16>, vector<112x224xbf16>, vector<14x224xf32> -> vector<14x224xf32>
    %58 = arith.addf %50, %57 : vector<14x224xf32>
    %c1_50 = arith.constant 1 : index
    %c0_51 = arith.constant 0 : index
    %c0_52 = arith.constant 0 : index
    %59 = vector.load %arg5[%c1_50, %c0_51, %c0_52] : memref<5x14x28xbf16, #tpu.memory_space<vmem>>, vector<1x14x28xbf16>
    %60 = vector.shape_cast %59 : vector<1x14x28xbf16> to vector<14x28xbf16>
    %cst_53 = arith.constant dense<0.000000e+00> : vector<14x112xf32>
    %61 = tpu.matmul %60, %49, %cst_53 {dimension_numbers = #tpu.dot_dimension_numbers<[1], [0], [0], [1], [0, 0, 1, 1], [], []>} : vector<14x28xbf16>, vector<28x112xbf16>, vector<14x112xf32> -> vector<14x112xf32>
    %62 = arith.truncf %61 : vector<14x112xf32> to vector<14x112xbf16>
    %c1_54 = arith.constant 1 : index
    %c0_55 = arith.constant 0 : index
    %c0_56 = arith.constant 0 : index
    %63 = vector.load %arg6[%c1_54, %c0_55, %c0_56] : memref<5x112x224xbf16, #tpu.memory_space<vmem>>, vector<1x112x224xbf16>
    %64 = vector.shape_cast %63 : vector<1x112x224xbf16> to vector<112x224xbf16>
    %cst_57 = arith.constant dense<0.000000e+00> : vector<14x224xf32>
    %65 = tpu.matmul %62, %64, %cst_57 {dimension_numbers = #tpu.dot_dimension_numbers<[1], [0], [0], [1], [0, 0, 1, 1], [], []>} : vector<14x112xbf16>, vector<112x224xbf16>, vector<14x224xf32> -> vector<14x224xf32>
    %66 = arith.addf %58, %65 : vector<14x224xf32>
    %c2_58 = arith.constant 2 : index
    %c0_59 = arith.constant 0 : index
    %c0_60 = arith.constant 0 : index
    %67 = vector.load %arg5[%c2_58, %c0_59, %c0_60] : memref<5x14x28xbf16, #tpu.memory_space<vmem>>, vector<1x14x28xbf16>
    %68 = vector.shape_cast %67 : vector<1x14x28xbf16> to vector<14x28xbf16>
    %cst_61 = arith.constant dense<0.000000e+00> : vector<14x112xf32>
    %69 = tpu.matmul %68, %49, %cst_61 {dimension_numbers = #tpu.dot_dimension_numbers<[1], [0], [0], [1], [0, 0, 1, 1], [], []>} : vector<14x28xbf16>, vector<28x112xbf16>, vector<14x112xf32> -> vector<14x112xf32>
    %70 = arith.truncf %69 : vector<14x112xf32> to vector<14x112xbf16>
    %c2_62 = arith.constant 2 : index
    %c0_63 = arith.constant 0 : index
    %c0_64 = arith.constant 0 : index
    %71 = vector.load %arg6[%c2_62, %c0_63, %c0_64] : memref<5x112x224xbf16, #tpu.memory_space<vmem>>, vector<1x112x224xbf16>
    %72 = vector.shape_cast %71 : vector<1x112x224xbf16> to vector<112x224xbf16>
    %cst_65 = arith.constant dense<0.000000e+00> : vector<14x224xf32>
    %73 = tpu.matmul %70, %72, %cst_65 {dimension_numbers = #tpu.dot_dimension_numbers<[1], [0], [0], [1], [0, 0, 1, 1], [], []>} : vector<14x112xbf16>, vector<112x224xbf16>, vector<14x224xf32> -> vector<14x224xf32>
    %74 = arith.addf %66, %73 : vector<14x224xf32>
    %c3_66 = arith.constant 3 : index
    %c0_67 = arith.constant 0 : index
    %c0_68 = arith.constant 0 : index
    %75 = vector.load %arg5[%c3_66, %c0_67, %c0_68] : memref<5x14x28xbf16, #tpu.memory_space<vmem>>, vector<1x14x28xbf16>
    %76 = vector.shape_cast %75 : vector<1x14x28xbf16> to vector<14x28xbf16>
    %cst_69 = arith.constant dense<0.000000e+00> : vector<14x112xf32>
    %77 = tpu.matmul %76, %49, %cst_69 {dimension_numbers = #tpu.dot_dimension_numbers<[1], [0], [0], [1], [0, 0, 1, 1], [], []>} : vector<14x28xbf16>, vector<28x112xbf16>, vector<14x112xf32> -> vector<14x112xf32>
    %78 = arith.truncf %77 : vector<14x112xf32> to vector<14x112xbf16>
    %c3_70 = arith.constant 3 : index
    %c0_71 = arith.constant 0 : index
    %c0_72 = arith.constant 0 : index
    %79 = vector.load %arg6[%c3_70, %c0_71, %c0_72] : memref<5x112x224xbf16, #tpu.memory_space<vmem>>, vector<1x112x224xbf16>
    %80 = vector.shape_cast %79 : vector<1x112x224xbf16> to vector<112x224xbf16>
    %cst_73 = arith.constant dense<0.000000e+00> : vector<14x224xf32>
    %81 = tpu.matmul %78, %80, %cst_73 {dimension_numbers = #tpu.dot_dimension_numbers<[1], [0], [0], [1], [0, 0, 1, 1], [], []>} : vector<14x112xbf16>, vector<112x224xbf16>, vector<14x224xf32> -> vector<14x224xf32>
    %82 = arith.addf %74, %81 : vector<14x224xf32>
    %c4_74 = arith.constant 4 : index
    %c0_75 = arith.constant 0 : index
    %c0_76 = arith.constant 0 : index
    %83 = vector.load %arg5[%c4_74, %c0_75, %c0_76] : memref<5x14x28xbf16, #tpu.memory_space<vmem>>, vector<1x14x28xbf16>
    %84 = vector.shape_cast %83 : vector<1x14x28xbf16> to vector<14x28xbf16>
    %cst_77 = arith.constant dense<0.000000e+00> : vector<14x112xf32>
    %85 = tpu.matmul %84, %49, %cst_77 {dimension_numbers = #tpu.dot_dimension_numbers<[1], [0], [0], [1], [0, 0, 1, 1], [], []>} : vector<14x28xbf16>, vector<28x112xbf16>, vector<14x112xf32> -> vector<14x112xf32>
    %86 = arith.truncf %85 : vector<14x112xf32> to vector<14x112xbf16>
    %c4_78 = arith.constant 4 : index
    %c0_79 = arith.constant 0 : index
    %c0_80 = arith.constant 0 : index
    %87 = vector.load %arg6[%c4_78, %c0_79, %c0_80] : memref<5x112x224xbf16, #tpu.memory_space<vmem>>, vector<1x112x224xbf16>
    %88 = vector.shape_cast %87 : vector<1x112x224xbf16> to vector<112x224xbf16>
    %cst_81 = arith.constant dense<0.000000e+00> : vector<14x224xf32>
    %89 = tpu.matmul %86, %88, %cst_81 {dimension_numbers = #tpu.dot_dimension_numbers<[1], [0], [0], [1], [0, 0, 1, 1], [], []>} : vector<14x112xbf16>, vector<112x224xbf16>, vector<14x224xf32> -> vector<14x224xf32>
    %90 = arith.addf %82, %89 : vector<14x224xf32>
    %cst_82 = arith.constant 0.000000e+00 : f32
    %91 = vector.broadcast %cst_82 : f32 to vector<14x224xf32>
    %92 = arith.maximumf %90, %91 : vector<14x224xf32>
    %93 = arith.truncf %92 : vector<14x224xf32> to vector<14x224xbf16>
    %cst_83 = arith.constant 0.000000e+00 : f32
    %94 = vector.broadcast %cst_83 : f32 to vector<7x224xf32>
    %c0_84 = arith.constant 0 : index
    %c0_85 = arith.constant 0 : index
    %c0_86 = arith.constant 0 : index
    %95 = vector.load %arg7[%c0_84, %c0_85, %c0_86] : memref<5x7x14xbf16, #tpu.memory_space<vmem>>, vector<1x7x14xbf16>
    %96 = vector.shape_cast %95 : vector<1x7x14xbf16> to vector<7x14xbf16>
    %cst_87 = arith.constant dense<0.000000e+00> : vector<7x224xf32>
    %97 = tpu.matmul %96, %93, %cst_87 {dimension_numbers = #tpu.dot_dimension_numbers<[1], [0], [0], [1], [0, 0, 1, 1], [], []>} : vector<7x14xbf16>, vector<14x224xbf16>, vector<7x224xf32> -> vector<7x224xf32>
    %98 = arith.truncf %97 : vector<7x224xf32> to vector<7x224xbf16>
    %c0_88 = arith.constant 0 : index
    %c0_89 = arith.constant 0 : index
    %c0_90 = arith.constant 0 : index
    %99 = vector.load %arg8[%c0_88, %c0_89, %c0_90] : memref<5x224x224xbf16, #tpu.memory_space<vmem>>, vector<1x224x224xbf16>
    %100 = vector.shape_cast %99 : vector<1x224x224xbf16> to vector<224x224xbf16>
    %cst_91 = arith.constant dense<0.000000e+00> : vector<7x224xf32>
    %101 = tpu.matmul %98, %100, %cst_91 {dimension_numbers = #tpu.dot_dimension_numbers<[1], [0], [0], [1], [0, 0, 1, 1], [], []>} : vector<7x224xbf16>, vector<224x224xbf16>, vector<7x224xf32> -> vector<7x224xf32>
    %102 = arith.addf %94, %101 : vector<7x224xf32>
    %c1_92 = arith.constant 1 : index
    %c0_93 = arith.constant 0 : index
    %c0_94 = arith.constant 0 : index
    %103 = vector.load %arg7[%c1_92, %c0_93, %c0_94] : memref<5x7x14xbf16, #tpu.memory_space<vmem>>, vector<1x7x14xbf16>
    %104 = vector.shape_cast %103 : vector<1x7x14xbf16> to vector<7x14xbf16>
    %cst_95 = arith.constant dense<0.000000e+00> : vector<7x224xf32>
    %105 = tpu.matmul %104, %93, %cst_95 {dimension_numbers = #tpu.dot_dimension_numbers<[1], [0], [0], [1], [0, 0, 1, 1], [], []>} : vector<7x14xbf16>, vector<14x224xbf16>, vector<7x224xf32> -> vector<7x224xf32>
    %106 = arith.truncf %105 : vector<7x224xf32> to vector<7x224xbf16>
    %c1_96 = arith.constant 1 : index
    %c0_97 = arith.constant 0 : index
    %c0_98 = arith.constant 0 : index
    %107 = vector.load %arg8[%c1_96, %c0_97, %c0_98] : memref<5x224x224xbf16, #tpu.memory_space<vmem>>, vector<1x224x224xbf16>
    %108 = vector.shape_cast %107 : vector<1x224x224xbf16> to vector<224x224xbf16>
    %cst_99 = arith.constant dense<0.000000e+00> : vector<7x224xf32>
    %109 = tpu.matmul %106, %108, %cst_99 {dimension_numbers = #tpu.dot_dimension_numbers<[1], [0], [0], [1], [0, 0, 1, 1], [], []>} : vector<7x224xbf16>, vector<224x224xbf16>, vector<7x224xf32> -> vector<7x224xf32>
    %110 = arith.addf %102, %109 : vector<7x224xf32>
    %c2_100 = arith.constant 2 : index
    %c0_101 = arith.constant 0 : index
    %c0_102 = arith.constant 0 : index
    %111 = vector.load %arg7[%c2_100, %c0_101, %c0_102] : memref<5x7x14xbf16, #tpu.memory_space<vmem>>, vector<1x7x14xbf16>
    %112 = vector.shape_cast %111 : vector<1x7x14xbf16> to vector<7x14xbf16>
    %cst_103 = arith.constant dense<0.000000e+00> : vector<7x224xf32>
    %113 = tpu.matmul %112, %93, %cst_103 {dimension_numbers = #tpu.dot_dimension_numbers<[1], [0], [0], [1], [0, 0, 1, 1], [], []>} : vector<7x14xbf16>, vector<14x224xbf16>, vector<7x224xf32> -> vector<7x224xf32>
    %114 = arith.truncf %113 : vector<7x224xf32> to vector<7x224xbf16>
    %c2_104 = arith.constant 2 : index
    %c0_105 = arith.constant 0 : index
    %c0_106 = arith.constant 0 : index
    %115 = vector.load %arg8[%c2_104, %c0_105, %c0_106] : memref<5x224x224xbf16, #tpu.memory_space<vmem>>, vector<1x224x224xbf16>
    %116 = vector.shape_cast %115 : vector<1x224x224xbf16> to vector<224x224xbf16>
    %cst_107 = arith.constant dense<0.000000e+00> : vector<7x224xf32>
    %117 = tpu.matmul %114, %116, %cst_107 {dimension_numbers = #tpu.dot_dimension_numbers<[1], [0], [0], [1], [0, 0, 1, 1], [], []>} : vector<7x224xbf16>, vector<224x224xbf16>, vector<7x224xf32> -> vector<7x224xf32>
    %118 = arith.addf %110, %117 : vector<7x224xf32>
    %c3_108 = arith.constant 3 : index
    %c0_109 = arith.constant 0 : index
    %c0_110 = arith.constant 0 : index
    %119 = vector.load %arg7[%c3_108, %c0_109, %c0_110] : memref<5x7x14xbf16, #tpu.memory_space<vmem>>, vector<1x7x14xbf16>
    %120 = vector.shape_cast %119 : vector<1x7x14xbf16> to vector<7x14xbf16>
    %cst_111 = arith.constant dense<0.000000e+00> : vector<7x224xf32>
    %121 = tpu.matmul %120, %93, %cst_111 {dimension_numbers = #tpu.dot_dimension_numbers<[1], [0], [0], [1], [0, 0, 1, 1], [], []>} : vector<7x14xbf16>, vector<14x224xbf16>, vector<7x224xf32> -> vector<7x224xf32>
    %122 = arith.truncf %121 : vector<7x224xf32> to vector<7x224xbf16>
    %c3_112 = arith.constant 3 : index
    %c0_113 = arith.constant 0 : index
    %c0_114 = arith.constant 0 : index
    %123 = vector.load %arg8[%c3_112, %c0_113, %c0_114] : memref<5x224x224xbf16, #tpu.memory_space<vmem>>, vector<1x224x224xbf16>
    %124 = vector.shape_cast %123 : vector<1x224x224xbf16> to vector<224x224xbf16>
    %cst_115 = arith.constant dense<0.000000e+00> : vector<7x224xf32>
    %125 = tpu.matmul %122, %124, %cst_115 {dimension_numbers = #tpu.dot_dimension_numbers<[1], [0], [0], [1], [0, 0, 1, 1], [], []>} : vector<7x224xbf16>, vector<224x224xbf16>, vector<7x224xf32> -> vector<7x224xf32>
    %126 = arith.addf %118, %125 : vector<7x224xf32>
    %c4_116 = arith.constant 4 : index
    %c0_117 = arith.constant 0 : index
    %c0_118 = arith.constant 0 : index
    %127 = vector.load %arg7[%c4_116, %c0_117, %c0_118] : memref<5x7x14xbf16, #tpu.memory_space<vmem>>, vector<1x7x14xbf16>
    %128 = vector.shape_cast %127 : vector<1x7x14xbf16> to vector<7x14xbf16>
    %cst_119 = arith.constant dense<0.000000e+00> : vector<7x224xf32>
    %129 = tpu.matmul %128, %93, %cst_119 {dimension_numbers = #tpu.dot_dimension_numbers<[1], [0], [0], [1], [0, 0, 1, 1], [], []>} : vector<7x14xbf16>, vector<14x224xbf16>, vector<7x224xf32> -> vector<7x224xf32>
    %130 = arith.truncf %129 : vector<7x224xf32> to vector<7x224xbf16>
    %c4_120 = arith.constant 4 : index
    %c0_121 = arith.constant 0 : index
    %c0_122 = arith.constant 0 : index
    %131 = vector.load %arg8[%c4_120, %c0_121, %c0_122] : memref<5x224x224xbf16, #tpu.memory_space<vmem>>, vector<1x224x224xbf16>
    %132 = vector.shape_cast %131 : vector<1x224x224xbf16> to vector<224x224xbf16>
    %cst_123 = arith.constant dense<0.000000e+00> : vector<7x224xf32>
    %133 = tpu.matmul %130, %132, %cst_123 {dimension_numbers = #tpu.dot_dimension_numbers<[1], [0], [0], [1], [0, 0, 1, 1], [], []>} : vector<7x224xbf16>, vector<224x224xbf16>, vector<7x224xf32> -> vector<7x224xf32>
    %134 = arith.addf %126, %133 : vector<7x224xf32>
    %c0_124 = arith.constant 0 : index
    %c0_125 = arith.constant 0 : index
    %c0_126 = arith.constant 0 : index
    %135 = vector.load %arg13[%c0_124, %c0_125, %c0_126] : memref<1x7x224xf32, #tpu.memory_space<vmem>>, vector<1x7x224xf32>
    %136 = vector.shape_cast %135 : vector<1x7x224xf32> to vector<7x224xf32>
    %137 = vector.shape_cast %134 : vector<7x224xf32> to vector<1x7x224xf32>
    tpu.vector_store %arg13[%c0_124, %c0_125, %c0_126], %137 {strides = array<i32>} : memref<1x7x224xf32, #tpu.memory_space<vmem>>, vector<1x7x224xf32>,
    %cst_127 = arith.constant 0.000000e+00 : f32
    %138 = vector.broadcast %cst_127 : f32 to vector<7x224xf32>
    %139 = arith.maximumf %134, %138 : vector<7x224xf32>
    %140 = arith.truncf %139 : vector<7x224xf32> to vector<7x224xbf16>
    %cst_128 = arith.constant 0.000000e+00 : f32
    %141 = vector.broadcast %cst_128 : f32 to vector<1x64xf32>
    %142 = vector.extract_strided_slice %140 {offsets = [0, 0], sizes = [1, 224], strides = [1, 1]} : vector<7x224xbf16> to vector<1x224xbf16>
    %c0_129 = arith.constant 0 : index
    %c0_130 = arith.constant 0 : index
    %c0_131 = arith.constant 0 : index
    %143 = vector.load %arg9[%c0_129, %c0_130, %c0_131] : memref<7x224x64xbf16, #tpu.memory_space<vmem>>, vector<1x224x64xbf16>
    %144 = vector.shape_cast %143 : vector<1x224x64xbf16> to vector<224x64xbf16>
    %cst_132 = arith.constant dense<0.000000e+00> : vector<1x64xf32>
    %145 = tpu.matmul %142, %144, %cst_132 {dimension_numbers = #tpu.dot_dimension_numbers<[1], [0], [0], [1], [0, 0, 1, 1], [], []>} : vector<1x224xbf16>, vector<224x64xbf16>, vector<1x64xf32> -> vector<1x64xf32>
    %146 = arith.addf %141, %145 : vector<1x64xf32>
    %147 = vector.extract_strided_slice %140 {offsets = [1, 0], sizes = [1, 224], strides = [1, 1]} : vector<7x224xbf16> to vector<1x224xbf16>
    %c1_133 = arith.constant 1 : index
    %c0_134 = arith.constant 0 : index
    %c0_135 = arith.constant 0 : index
    %148 = vector.load %arg9[%c1_133, %c0_134, %c0_135] : memref<7x224x64xbf16, #tpu.memory_space<vmem>>, vector<1x224x64xbf16>
    %149 = vector.shape_cast %148 : vector<1x224x64xbf16> to vector<224x64xbf16>
    %cst_136 = arith.constant dense<0.000000e+00> : vector<1x64xf32>
    %150 = tpu.matmul %147, %149, %cst_136 {dimension_numbers = #tpu.dot_dimension_numbers<[1], [0], [0], [1], [0, 0, 1, 1], [], []>} : vector<1x224xbf16>, vector<224x64xbf16>, vector<1x64xf32> -> vector<1x64xf32>
    %151 = arith.addf %146, %150 : vector<1x64xf32>
    %152 = vector.extract_strided_slice %140 {offsets = [2, 0], sizes = [1, 224], strides = [1, 1]} : vector<7x224xbf16> to vector<1x224xbf16>
    %c2_137 = arith.constant 2 : index
    %c0_138 = arith.constant 0 : index
    %c0_139 = arith.constant 0 : index
    %153 = vector.load %arg9[%c2_137, %c0_138, %c0_139] : memref<7x224x64xbf16, #tpu.memory_space<vmem>>, vector<1x224x64xbf16>
    %154 = vector.shape_cast %153 : vector<1x224x64xbf16> to vector<224x64xbf16>
    %cst_140 = arith.constant dense<0.000000e+00> : vector<1x64xf32>
    %155 = tpu.matmul %152, %154, %cst_140 {dimension_numbers = #tpu.dot_dimension_numbers<[1], [0], [0], [1], [0, 0, 1, 1], [], []>} : vector<1x224xbf16>, vector<224x64xbf16>, vector<1x64xf32> -> vector<1x64xf32>
    %156 = arith.addf %151, %155 : vector<1x64xf32>
    %157 = vector.extract_strided_slice %140 {offsets = [3, 0], sizes = [1, 224], strides = [1, 1]} : vector<7x224xbf16> to vector<1x224xbf16>
    %c3_141 = arith.constant 3 : index
    %c0_142 = arith.constant 0 : index
    %c0_143 = arith.constant 0 : index
    %158 = vector.load %arg9[%c3_141, %c0_142, %c0_143] : memref<7x224x64xbf16, #tpu.memory_space<vmem>>, vector<1x224x64xbf16>
    %159 = vector.shape_cast %158 : vector<1x224x64xbf16> to vector<224x64xbf16>
    %cst_144 = arith.constant dense<0.000000e+00> : vector<1x64xf32>
    %160 = tpu.matmul %157, %159, %cst_144 {dimension_numbers = #tpu.dot_dimension_numbers<[1], [0], [0], [1], [0, 0, 1, 1], [], []>} : vector<1x224xbf16>, vector<224x64xbf16>, vector<1x64xf32> -> vector<1x64xf32>
    %161 = arith.addf %156, %160 : vector<1x64xf32>
    %162 = vector.extract_strided_slice %140 {offsets = [4, 0], sizes = [1, 224], strides = [1, 1]} : vector<7x224xbf16> to vector<1x224xbf16>
    %c4_145 = arith.constant 4 : index
    %c0_146 = arith.constant 0 : index
    %c0_147 = arith.constant 0 : index
    %163 = vector.load %arg9[%c4_145, %c0_146, %c0_147] : memref<7x224x64xbf16, #tpu.memory_space<vmem>>, vector<1x224x64xbf16>
    %164 = vector.shape_cast %163 : vector<1x224x64xbf16> to vector<224x64xbf16>
    %cst_148 = arith.constant dense<0.000000e+00> : vector<1x64xf32>
    %165 = tpu.matmul %162, %164, %cst_148 {dimension_numbers = #tpu.dot_dimension_numbers<[1], [0], [0], [1], [0, 0, 1, 1], [], []>} : vector<1x224xbf16>, vector<224x64xbf16>, vector<1x64xf32> -> vector<1x64xf32>
    %166 = arith.addf %161, %165 : vector<1x64xf32>
    %167 = vector.extract_strided_slice %140 {offsets = [5, 0], sizes = [1, 224], strides = [1, 1]} : vector<7x224xbf16> to vector<1x224xbf16>
    %c5 = arith.constant 5 : index
    %c0_149 = arith.constant 0 : index
    %c0_150 = arith.constant 0 : index
    %168 = vector.load %arg9[%c5, %c0_149, %c0_150] : memref<7x224x64xbf16, #tpu.memory_space<vmem>>, vector<1x224x64xbf16>
    %169 = vector.shape_cast %168 : vector<1x224x64xbf16> to vector<224x64xbf16>
    %cst_151 = arith.constant dense<0.000000e+00> : vector<1x64xf32>
    %170 = tpu.matmul %167, %169, %cst_151 {dimension_numbers = #tpu.dot_dimension_numbers<[1], [0], [0], [1], [0, 0, 1, 1], [], []>} : vector<1x224xbf16>, vector<224x64xbf16>, vector<1x64xf32> -> vector<1x64xf32>
    %171 = arith.addf %166, %170 : vector<1x64xf32>
    %172 = vector.extract_strided_slice %140 {offsets = [6, 0], sizes = [1, 224], strides = [1, 1]} : vector<7x224xbf16> to vector<1x224xbf16>
    %c6 = arith.constant 6 : index
    %c0_152 = arith.constant 0 : index
    %c0_153 = arith.constant 0 : index
    %173 = vector.load %arg9[%c6, %c0_152, %c0_153] : memref<7x224x64xbf16, #tpu.memory_space<vmem>>, vector<1x224x64xbf16>
    %174 = vector.shape_cast %173 : vector<1x224x64xbf16> to vector<224x64xbf16>
    %cst_154 = arith.constant dense<0.000000e+00> : vector<1x64xf32>
    %175 = tpu.matmul %172, %174, %cst_154 {dimension_numbers = #tpu.dot_dimension_numbers<[1], [0], [0], [1], [0, 0, 1, 1], [], []>} : vector<1x224xbf16>, vector<224x64xbf16>, vector<1x64xf32> -> vector<1x64xf32>
    %176 = arith.addf %171, %175 : vector<1x64xf32>
    %cst_155 = arith.constant 0.000000e+00 : f32
    %177 = vector.broadcast %cst_155 : f32 to vector<1x64xf32>
    %178 = arith.maximumf %176, %177 : vector<1x64xf32>
    %179 = arith.truncf %178 : vector<1x64xf32> to vector<1x64xbf16>
    %c0_156 = arith.constant 0 : index
    %c0_157 = arith.constant 0 : index
    %180 = vector.load %arg10[%c0_156, %c0_157] : memref<64x1xbf16, #tpu.memory_space<vmem>>, vector<64x1xbf16>
    %cst_158 = arith.constant dense<0.000000e+00> : vector<1x1xf32>
    %181 = tpu.matmul %179, %180, %cst_158 {dimension_numbers = #tpu.dot_dimension_numbers<[1], [0], [0], [1], [0, 0, 1, 1], [], []>} : vector<1x64xbf16>, vector<64x1xbf16>, vector<1x1xf32> -> vector<1x1xf32>
    %c0_159 = arith.constant 0 : index
    %c0_160 = arith.constant 0 : index
    %182 = vector.load %arg11[%c0_159, %c0_160] : memref<1x1xf32, #tpu.memory_space<vmem>>, vector<1x1xf32>
    %183 = arith.addf %181, %182 : vector<1x1xf32>
    %c0_161 = arith.constant 0 : index
    %c0_162 = arith.constant 0 : index
    %c0_163 = arith.constant 0 : index
    %184 = vector.load %arg12[%c0_161, %c0_162, %c0_163] : memref<1x1x1xf32, #tpu.memory_space<vmem>>, vector<1x1x1xf32>
    %185 = vector.shape_cast %184 : vector<1x1x1xf32> to vector<1x1xf32>
    %186 = vector.shape_cast %183 : vector<1x1xf32> to vector<1x1x1xf32>
    tpu.vector_store %arg12[%c0_161, %c0_162, %c0_163], %186 {strides = array<i32>} : memref<1x1x1xf32, #tpu.memory_space<vmem>>, vector<1x1x1xf32>,
    return
  }
  func.func @transform_0(%arg0: i32) -> (i32, i32, i32) {
    %c0_i32 = arith.constant 0 : i32
    %c0_i32_0 = arith.constant 0 : i32
    %c0_i32_1 = arith.constant 0 : i32
    return %arg0, %c0_i32, %c0_i32_0 : i32, i32, i32
  }
  func.func @transform_1(%arg0: i32) -> (i32, i32, i32) {
    %c0_i32 = arith.constant 0 : i32
    %c0_i32_0 = arith.constant 0 : i32
    %c0_i32_1 = arith.constant 0 : i32
    %c0_i32_2 = arith.constant 0 : i32
    return %c0_i32, %c0_i32_0, %c0_i32_1 : i32, i32, i32
  }
  func.func @transform_2(%arg0: i32) -> (i32, i32, i32) {
    %c0_i32 = arith.constant 0 : i32
    %c0_i32_0 = arith.constant 0 : i32
    %c0_i32_1 = arith.constant 0 : i32
    %c0_i32_2 = arith.constant 0 : i32
    return %c0_i32, %c0_i32_0, %c0_i32_1 : i32, i32, i32
  }
  func.func @transform_3(%arg0: i32) -> (i32, i32) {
    %c0_i32 = arith.constant 0 : i32
    %c0_i32_0 = arith.constant 0 : i32
    %c0_i32_1 = arith.constant 0 : i32
    return %c0_i32, %c0_i32_0 : i32, i32
  }
  func.func @transform_4(%arg0: i32) -> (i32, i32, i32) {
    %c0_i32 = arith.constant 0 : i32
    %c0_i32_0 = arith.constant 0 : i32
    %c0_i32_1 = arith.constant 0 : i32
    %c0_i32_2 = arith.constant 0 : i32
    return %c0_i32, %c0_i32_0, %c0_i32_1 : i32, i32, i32
  }
  func.func @transform_5(%arg0: i32) -> (i32, i32, i32) {
    %c0_i32 = arith.constant 0 : i32
    %c0_i32_0 = arith.constant 0 : i32
    %c0_i32_1 = arith.constant 0 : i32
    %c0_i32_2 = arith.constant 0 : i32
    return %c0_i32, %c0_i32_0, %c0_i32_1 : i32, i32, i32
  }
  func.func @transform_6(%arg0: i32) -> (i32, i32, i32) {
    %c0_i32 = arith.constant 0 : i32
    %c0_i32_0 = arith.constant 0 : i32
    %c0_i32_1 = arith.constant 0 : i32
    %c0_i32_2 = arith.constant 0 : i32
    return %c0_i32, %c0_i32_0, %c0_i32_1 : i32, i32, i32
  }
  func.func @transform_7(%arg0: i32) -> (i32, i32, i32) {
    %c0_i32 = arith.constant 0 : i32
    %c0_i32_0 = arith.constant 0 : i32
    %c0_i32_1 = arith.constant 0 : i32
    %c0_i32_2 = arith.constant 0 : i32
    return %c0_i32, %c0_i32_0, %c0_i32_1 : i32, i32, i32
  }
  func.func @transform_8(%arg0: i32) -> (i32, i32, i32) {
    %c0_i32 = arith.constant 0 : i32
    %c0_i32_0 = arith.constant 0 : i32
    %c0_i32_1 = arith.constant 0 : i32
    %c0_i32_2 = arith.constant 0 : i32
    return %c0_i32, %c0_i32_0, %c0_i32_1 : i32, i32, i32
  }
  func.func @transform_9(%arg0: i32) -> (i32, i32) {
    %c0_i32 = arith.constant 0 : i32
    %c0_i32_0 = arith.constant 0 : i32
    %c0_i32_1 = arith.constant 0 : i32
    return %c0_i32, %c0_i32_0 : i32, i32
  }
  func.func @transform_10(%arg0: i32) -> (i32, i32) {
    %c0_i32 = arith.constant 0 : i32
    %c0_i32_0 = arith.constant 0 : i32
    %c0_i32_1 = arith.constant 0 : i32
    return %c0_i32, %c0_i32_0 : i32, i32
  }
  func.func @transform_11(%arg0: i32) -> (i32, i32, i32) {
    %c0_i32 = arith.constant 0 : i32
    %c0_i32_0 = arith.constant 0 : i32
    %c0_i32_1 = arith.constant 0 : i32
    return %arg0, %c0_i32, %c0_i32_0 : i32, i32, i32
  }
  func.func @transform_12(%arg0: i32) -> (i32, i32, i32) {
    %c0_i32 = arith.constant 0 : i32
    %c0_i32_0 = arith.constant 0 : i32
    %c0_i32_1 = arith.constant 0 : i32
    return %arg0, %c0_i32, %c0_i32_0 : i32, i32, i32
  }
}

</mosaic_0001>

<bundles_post_ra>
// kernel: vaegan_discriminator28_forward.1
= control target key start
LH: loop header
LB: loop body
LE: loop exit
PB: predicated region body
PF: predicated region fallthrough
CT: control target
= control target key end

     0   :  { %s7441_s0 = inlined_call_operand.vmem [shape: f32[2,28,28], index: 0, kind: input, shape index: {}]   ;;  %s7442_s1 = inlined_call_operand.vmem [shape: bf16[5,28,28], index: 1, kind: input, shape index: {}]   ;;  %s7443_s2 = inlined_call_operand.vmem [shape: bf16[5,28,112], index: 2, kind: input, shape index: {}]   ;;  %s7444_s3 = inlined_call_operand.vmem [shape: f32[1,112], index: 3, kind: input, shape index: {}]   ;;  %s7445_s4 = inlined_call_operand.vmem [shape: bf16[5,14,28], index: 4, kind: input, shape index: {}]   ;;  %s7446_s5 = inlined_call_operand.hbm [shape: bf16[5,112,224], index: 5, kind: input, shape index: {}]   ;;  %s7447_s6 = inlined_call_operand.vmem [shape: bf16[5,7,14], index: 6, kind: input, shape index: {}]   ;;  %s7448_s7 = inlined_call_operand.vmem [shape: bf16[5,224,224], index: 7, kind: input, shape index: {}]   ;;  %s7449_s8 = inlined_call_operand.vmem [shape: bf16[7,224,64], index: 8, kind: input, shape index: {}]   ;;  %s7450_s9 = inlined_call_operand.vmem [shape: bf16[64,1], index: 9, kind: input, shape index: {}]   ;;  %s7451_s10 = inlined_call_operand.<no memory space> [shape: f32[1,1], index: 10, kind: input, shape index: {}]   ;;  %s7452_s11 = inlined_call_operand.vmem [shape: f32[2,1,1], index: 11, kind: output, shape index: {0}]   ;;  %s7453_s12 = inlined_call_operand.vmem [shape: f32[2,7,224], index: 12, kind: output, shape index: {1}]  }
   0x1   :  { %v18_v0 = vstv %s7451_s10 }
   0x2   :  { %19 = vst [vmem:[#allocation2] sm:$0x1] %v18_v0 }
   0x3   :  { %20 = vsyncpa [#allocation4], 0  ;;  %s6276_s23 = smov 0  }
   0x4 LB: > { %s4766_s24 = sadd.s32 4294967295, %s6200_s23   ;;  %p4768_p0 = scmp.ge.s32.totalorder %s6200_s23, 1  ;;  %s6200_s23 = sphi %s6276_s23, %s26_s23  }
   0x5   : > { %p319_p1 = scmp.lt.s32.totalorder %s6200_s23, 3  ;;  %s6202_s25 = smov [#allocation3]  }
   0x6   : > { %s343_s26 = sshll.u32 %s6202_s25, 4  ;;  %p5706_p3 = scmp.eq.s32.totalorder %s4766_s24, 0  ;;  %s344_s26 = int_to_ptr.vmem [resolvable:$true] %s343_s26 }
   0x7   : > { %p6284_p2 = pnand %p4768_p0, %p319_p1  ;;  %s6175_s10 = scalar_lea.vmem %s344_s26, 8960 }
   0x8   : > { %p6176_p7 = scmp.ne.s32.totalorder %s344_s26, %s6175_s10  ;;  %p6183_p10 = scmp.lt.s32.totalorder %s344_s26, %s344_s26 }
   0x9   : > { %p5702_p4 = pneg %p6284_p2  ;;  %p6184_p11 = scmp.lt.s32.totalorder %s6175_s10, %s6175_s10 }
   0xb   : > { %p5703_p5 = pnand %p5706_p3, %p5702_p4  ;;  %p6185_p12 = por %p6184_p11, %p6183_p10 }
   0xd   : > { %p6166_p6 = pneg %p5703_p5 }
   0xf   : > { %p6178_p8 = pnand %p6176_p7, %p6166_p6 }
  0x11   : > { %p6179_p9 = pneg %p6178_p8 }
  0x13   : > { %p6186_p13 = pnand %p6185_p12, %p6179_p9 }
  0x15   : > { %6189 = shalt.err (!%p6186_p13)
}
  0x16   : > { %s6203_s28 = smov 128   ;;  %s6204_s29 = smov 8  }
  0x17   : > { %5705 = dma.hbm_to_vmem [thread:$0]  (!%p5703_p5), %s7446_s5, 8960, %s344_s26, [#allocation4], %s6203_s28, %s6203_s28, %s6204_s29  }
  0x18   : > { %382 = sbr.rel (%p6284_p2) target bundleno = 2906 (0xb5a), region = 64 }
  0x1d   : > { %6195 = dma.done.wait (%p5706_p3), [#allocation4], 8960  }
  0x1e   : > { %6197 = vsyncadd (%p5706_p3), [#allocation4], 4294958336  ;;  %p427_p0 = scmp.lt.s32.totalorder %s4766_s24, 1  ;;  %vm469_vm0 = vcmask 1045504   ;;  %vm462_vm1 = vcmask 228352   ;;  %v5722_v7 = vld [vmem:[%s7442_s1] sm:$0xff]  }
  0x1f   : > { %5560 = vmatprep.mubr.msk.bf16.mxu0 %vm462_vm1, %v5722_v7  ;;  %v5723_v9 = vld [vmem:[%s7442_s1 + $0x8] sm:$0x3f]   ;;  %v5724_v10 = vld [vmem:[%s7442_s1 + $0x10] sm:$0xff]   ;;  %v5725_v11 = vld [vmem:[%s7442_s1 + $0x18] sm:$0x3f]   ;;  %vm6206_vm2 = vmmov 0  }
  0x20   : > { %s7456_s24 = smov (!%p427_p0, %s4766_s24), 1  ;;  %v5726_v12 = vld [vmem:[%s7443_s2 + $0x8] sm:$0x3f]   ;;  %v5727_v14 = vld [vmem:[%s7443_s2] sm:$0xff]   ;;  %v5728_v15 = vld [vmem:[%s7443_s2 + $0x18] sm:$0x3f]  }
  0x21   : > { %s5494_s14 = sshll.u32 %s7456_s24, 5  ;;  %5691 = vmatprep.subr.msk.bf16.mxu1 %vm469_vm0, %v5726_v12  ;;  %v692_v13 = vsel %vm469_vm0, %v5726_v12, 0  ;;  %v623_v16 = vsel %vm469_vm0, %v5728_v15, 0  ;;  %v5729_v17 = vld [vmem:[%s7443_s2 + $0x10] sm:$0xff]   ;;  %v5730_v29 = vld [vmem:[%s7442_s1 + $0x20] sm:$0xff]   ;;  %vm1416_vm3 = vcmask 916480   ;;  %s434_s10 = scalar_lea.vmem %s7452_s11, %s7456_s24 }
  0x22   : > { %s431_s17 = scalar_lea.vmem %s7441_s0, %s5494_s14  ;;  %5581 = vmatpush3.bf16.msra.mxu1 %v692_v13  ;;  %v5731_v31 = vld [vmem:[%s7442_s1 + $0x28] sm:$0x3f]   ;;  %v5732_v32 = vld [vmem:[%s7442_s1 + $0x30] sm:$0xff]   ;;  %v5733_v33 = vld [vmem:[%s7442_s1 + $0x38] sm:$0x3f]   ;;  %vm2154_vm4 = vcmask 1046528  }
  0x23   : > { %v441_v1 = vld [vmem:[%s431_s17] sm:$0xff]  ;;  %v442_v2 = vld [vmem:[%s431_s17 + $0x8] sm:$0xff]  ;;  %v443_v3 = vld [vmem:[%s431_s17 + $0x10] sm:$0xff]  ;;  %5582 = vmatprep.subr.bf16.mxu1 %v5727_v14  ;;  %vm2150_vm5 = vcmask 113664   ;;  %vm2449_vm6 = vcmask 785408   ;;  %s5495_s27 = sshll.u32 %s7456_s24, 4 }
  0x24   : > { %v444_v4 = vld [vmem:[%s431_s17 + $0x18] sm:$0xf]  ;;  %v6304_v5 = vpack.c.bf16 %v442_v2, %v441_v1  ;;  %v5734_v34 = vld [vmem:[%s7442_s1 + $0x40] sm:$0xff]   ;;  %v5735_v35 = vld [vmem:[%s7442_s1 + $0x48] sm:$0x3f]   ;;  %s439_s29 = scalar_lea.vmem %s7453_s12, %s5495_s27  ;;  %vm3468_vm7 = vcmask 784384  }
  0x25   : > { %v6306_v6 = vpack.c.bf16 %v444_v4, %v443_v3  ;;  %v5736_v36 = vld [vmem:[%s7443_s2 + $0x28] sm:$0x3f]   ;;  %v5737_v38 = vld [vmem:[%s7443_s2 + $0x20] sm:$0xff]   ;;  %v5738_v39 = vld [vmem:[%s7443_s2 + $0x38] sm:$0x3f]   ;;  %v6205_v3 = vmov 0.0  }
  0x26   : > { %5583 = vmatpush3.bf16.msra.mxu1 %v5727_v14  ;;  %v838_v37 = vsel %vm469_vm0, %v5736_v36, 0  ;;  %v988_v51 = vsel %vm469_vm0, %v5738_v39, 0  ;;  %v5739_v52 = vld [vmem:[%s7443_s2 + $0x30] sm:$0xff]   ;;  %v5740_v55 = vld [vmem:[%s7443_s2 + $0x48] sm:$0x3f]   ;;  %v5741_v61 = vld [vmem:[%s7443_s2 + $0x40] sm:$0xff]  }
  0x27   : > { %5688 = vmatprep.subr.msk.bf16.mxu0 %vm469_vm0, %v6306_v6  ;;  %v6315_v8 = vsel %vm469_vm0, %v6306_v6, 0  ;;  %5693 = vmatprep.subr.msk.bf16.mxu1 %vm469_vm0, %v5736_v36  ;;  %v1138_v60 = vsel %vm469_vm0, %v5740_v55, 0  ;;  %vm4628_vm8 = vcmask 523264   ;;  %vm4672_vm9 = vcmask 0  }
  0x28   : > { %5557 = vmatpush3.bf16.msra.mxu0 %v6315_v8 }
  0x29   : > { %5558 = vmatprep.subr.bf16.mxu0 %v6304_v5 }
  0x2c   : > { %5559 = vmatpush3.bf16.msra.mxu0 %v6304_v5 }
  0x2d   : > { %5689 = vmatprep.subr.msk.bf16.mxu0 %vm469_vm0, %v6306_v6 }
  0x2f   : > { %5561 = vmatmul.mubr.msk.bf16.vlgmr.msra.gmra.mxu0 %vm462_vm1, %v5723_v9 }
  0x30   : > { %5565 = vmatpush3.bf16.msra.mxu0 %v6315_v8  ;;  %5568 = vmatprep.mubr.msk.bf16.mxu0 %vm462_vm1, %v5724_v10 }
  0x31   : > { %5566 = vmatprep.subr.bf16.mxu0 %v6304_v5 }
  0x34   : > { %5567 = vmatpush3.bf16.msra.mxu0 %v6304_v5 }
  0x35   : > { %5690 = vmatprep.subr.msk.bf16.mxu0 %vm469_vm0, %v5728_v15 }
  0x37   : > { %5569 = vmatmul.mubr.msk.bf16.vlgmr.msra.gmra.mxu0 %vm462_vm1, %v5725_v11 }
  0x38   : > { %5573 = vmatpush3.bf16.msra.mxu0 %v623_v16 }
  0x39   : > { %5574 = vmatprep.subr.bf16.mxu0 %v5729_v17 }
  0x3c   : > { %5575 = vmatpush3.bf16.msra.mxu0 %v5729_v17 }
  0x3d   : > { %5692 = vmatprep.subr.msk.bf16.mxu0 %vm469_vm0, %v6306_v6 }
  0xef   : > { %v5562_v18 = vpop.f32.mrf.mxu0 }
  0xf1   : > { %v507_v19 = vpop.f32.mrf.mxu0 }
  0xf3   : > { %v5563_v20 = vpop.f32.mrf.mxu0 }
  0xf4   : > { %v523_v23 = vpack.c.bf16 %v5563_v20, %v5562_v18 }
  0xf5   : > { %v510_v21 = vpop.f32.mrf.mxu0 }
  0xf6   : > { %v522_v22 = vpack.c.bf16 %v510_v21, %v507_v19 }
  0xf7   : > { %v5570_v24 = vpop.f32.mrf.mxu0 }
  0xf8   : > { %5584 = vmatprep.mubr.msk.bf16.mxu1 %vm462_vm1, %v522_v22 }
  0xf9   : > { %v583_v25 = vpop.f32.mrf.mxu0  ;;  %5585 = vmatmul.mubr.msk.bf16.vlgmr.msra.gmra.mxu1 %vm462_vm1, %v523_v23 }
  0xfa   : > { %5597 = vmatpush3.bf16.msra.mxu1 %v838_v37 }
  0xfb   : > { %v5571_v26 = vpop.f32.mrf.mxu0  ;;  %5598 = vmatprep.subr.bf16.mxu1 %v5737_v38 }
  0xfc   : > { %v599_v30 = vpack.c.bf16 %v5571_v26, %v5570_v24 }
  0xfd   : > { %v586_v27 = vpop.f32.mrf.mxu0 }
  0xfe   : > { %v598_v28 = vpack.c.bf16 %v586_v27, %v583_v25  ;;  %5599 = vmatpush3.bf16.msra.mxu1 %v5737_v38  ;;  %v4849_v27 = vld [vmem:[%s7444_s3] ss:$0 sm:$0xff] }
  0xff   : > { %5695 = vmatprep.subr.msk.bf16.mxu1 %vm469_vm0, %v5738_v39 }
 0x100   : > { %5576 = vmatprep.mubr.msk.bf16.mxu0 %vm462_vm1, %v598_v28 }
 0x101   : > { %5577 = vmatmul.mubr.msk.bf16.vlgmr.msra.gmra.mxu0 %vm462_vm1, %v599_v30 }
 0x102   : > { %5589 = vmatpush3.bf16.msra.mxu0 %v6315_v8  ;;  %5592 = vmatprep.mubr.msk.bf16.mxu0 %vm462_vm1, %v5730_v29 }
 0x103   : > { %5590 = vmatprep.subr.bf16.mxu0 %v6304_v5 }
 0x106   : > { %5591 = vmatpush3.bf16.msra.mxu0 %v6304_v5 }
 0x107   : > { %5694 = vmatprep.subr.msk.bf16.mxu0 %vm469_vm0, %v6306_v6 }
 0x109   : > { %5593 = vmatmul.mubr.msk.bf16.vlgmr.msra.gmra.mxu0 %vm462_vm1, %v5731_v31 }
 0x10a   : > { %5605 = vmatpush3.bf16.msra.mxu0 %v6315_v8  ;;  %5608 = vmatprep.mubr.msk.bf16.mxu0 %vm462_vm1, %v5732_v32 }
 0x10b   : > { %5606 = vmatprep.subr.bf16.mxu0 %v6304_v5 }
 0x10e   : > { %5607 = vmatpush3.bf16.msra.mxu0 %v6304_v5 }
 0x10f   : > { %5696 = vmatprep.subr.msk.bf16.mxu0 %vm469_vm0, %v6306_v6 }
 0x111   : > { %5609 = vmatmul.mubr.msk.bf16.vlgmr.msra.gmra.mxu0 %vm462_vm1, %v5733_v33 }
 0x112   : > { %5621 = vmatpush3.bf16.msra.mxu0 %v6315_v8  ;;  %5624 = vmatprep.mubr.msk.bf16.mxu0 %vm462_vm1, %v5734_v34 }
 0x113   : > { %5622 = vmatprep.subr.bf16.mxu0 %v6304_v5 }
 0x116   : > { %5623 = vmatpush3.bf16.msra.mxu0 %v6304_v5 }
 0x117   : > { %5636 = vmatprep.subr.bf16.mxu0 %v6205_v3 }
 0x119   : > { %5625 = vmatmul.mubr.msk.bf16.vlgmr.msra.gmra.mxu0 %vm462_vm1, %v5735_v35 }
 0x11a   : > { %5640 = vmatprep.mubr.msk.bf16.mxu0 %vm6206_vm2, %v6205_v3 }
 0x1b9   : > { %v5586_v4 = vpop.f32.mrf.mxu1 }
 0x1bb   : > { %v728_v5 = vpop.f32.mrf.mxu1 }
 0x1bd   : > { %v5587_v6 = vpop.f32.mrf.mxu1 }
 0x1bf   : > { %v731_v7 = vpop.f32.mrf.mxu1 }
 0x1c1   : > { %v5578_v40 = vpop.f32.mrf.mxu0 }
 0x1c2   : > { %v737_v14 = vadd.f32 %v5586_v4, %v5578_v40  ;;  %v5773_v4 = vld [vmem:[#allocation3 + $0x24] ss:$8 sps:$4 sm:$0xff]  }
 0x1c3   : > { %v659_v41 = vpop.f32.mrf.mxu0 }
 0x1c4   : > { %v729_v16 = vadd.f32 %v728_v5, %v659_v41  ;;  %v5768_v5 = vld [vmem:[#allocation3 + $0x90] ss:$8 sps:$4 sm:$0xff]  }
 0x1c5   : > { %v5579_v42 = vpop.f32.mrf.mxu0 }
 0x1c6   : > { %v740_v19 = vadd.f32 %v5587_v6, %v5579_v42  ;;  %v5771_v6 = vld [vmem:[#allocation3 + $0x20] ss:$8 sps:$4 sm:$0xff]  }
 0x1c7   : > { %v662_v43 = vpop.f32.mrf.mxu0 }
 0x1c8   : > { %v732_v23 = vadd.f32 %v731_v7, %v662_v43  ;;  %v5776_v7 = vld [vmem:[#allocation3 + $0x84] ss:$8 sps:$4 sm:$0xff]  }
 0x1c9   : > { %v5594_v44 = vpop.f32.mrf.mxu0 }
 0x1cb   : > { %v798_v45 = vpop.f32.mrf.mxu0 }
 0x1cd   : > { %v5595_v46 = vpop.f32.mrf.mxu0 }
 0x1ce   : > { %v814_v49 = vpack.c.bf16 %v5595_v46, %v5594_v44 }
 0x1cf   : > { %v801_v47 = vpop.f32.mrf.mxu0 }
 0x1d0   : > { %v813_v48 = vpack.c.bf16 %v801_v47, %v798_v45 }
 0x1d1   : > { %v5610_v50 = vpop.f32.mrf.mxu0 }
 0x1d2   : > { %5600 = vmatprep.mubr.msk.bf16.mxu1 %vm462_vm1, %v813_v48  ;;  %v5746_v48 = vld [vmem:[#allocation3 + $0xd4] ss:$8 sps:$4 sm:$0xff]  }
 0x1d3   : > { %5601 = vmatmul.mubr.msk.bf16.vlgmr.msra.gmra.mxu1 %vm462_vm1, %v814_v49  ;;  %v948_v53 = vpop.f32.mrf.mxu0  ;;  %v5749_v49 = vld [vmem:[#allocation3 + $0x64] ss:$8 sps:$4 sm:$0xff]  }
 0x1d4   : > { %5613 = vmatpush3.bf16.msra.mxu1 %v988_v51  ;;  %v5743_v51 = vld [vmem:[%s7445_s4 + $0x8] sm:$0x7f]  }
 0x1d5   : > { %v5611_v54 = vpop.f32.mrf.mxu0  ;;  %5614 = vmatprep.subr.bf16.mxu1 %v5739_v52 }
 0x1d6   : > { %v964_v58 = vpack.c.bf16 %v5611_v54, %v5610_v50  ;;  %v5742_v50 = vld [vmem:[%s7445_s4] sm:$0x7f]  }
 0x1d7   : > { %v951_v56 = vpop.f32.mrf.mxu0  ;;  %v5752_v54 = vld [vmem:[#allocation3 + $0xc4] ss:$8 sps:$4 sm:$0xff]  }
 0x1d8   : > { %v963_v57 = vpack.c.bf16 %v951_v56, %v948_v53  ;;  %5615 = vmatpush3.bf16.msra.mxu1 %v5739_v52  ;;  %v5744_v52 = vld [vmem:[#allocation3 + $0xd0] ss:$8 sps:$4 sm:$0xff]   ;;  %v5747_v53 = vld [vmem:[#allocation3 + $0x60] ss:$8 sps:$4 sm:$0xff]  }
 0x1d9   : > { %v5626_v59 = vpop.f32.mrf.mxu0  ;;  %5697 = vmatprep.subr.msk.bf16.mxu1 %vm469_vm0, %v5740_v55  ;;  %v5755_v55 = vld [vmem:[#allocation3 + $0x54] ss:$8 sps:$4 sm:$0xff]   ;;  %v5750_v56 = vld [vmem:[#allocation3 + $0xc0] ss:$8 sps:$4 sm:$0xff]  }
 0x1da   : > { %5616 = vmatprep.mubr.msk.bf16.mxu1 %vm462_vm1, %v963_v57  ;;  %v5753_v57 = vld [vmem:[#allocation3 + $0x50] ss:$8 sps:$4 sm:$0xff]  }
 0x1db   : > { %5617 = vmatmul.mubr.msk.bf16.vlgmr.msra.gmra.mxu1 %vm462_vm1, %v964_v58  ;;  %v1098_v62 = vpop.f32.mrf.mxu0  ;;  %v5758_v58 = vld [vmem:[#allocation3 + $0xb4] ss:$8 sps:$4 sm:$0xff]  }
 0x1dc   : > { %5629 = vmatpush3.bf16.msra.mxu1 %v1138_v60  ;;  %v5756_v60 = vld [vmem:[#allocation3 + $0xb0] ss:$8 sps:$4 sm:$0xff]  }
 0x1dd   : > { %v5627_v63 = vpop.f32.mrf.mxu0  ;;  %5630 = vmatprep.subr.bf16.mxu1 %v5741_v61 }
 0x1de   : > { %v1114_v2 = vpack.c.bf16 %v5627_v63, %v5626_v59  ;;  %v5761_v59 = vld [vmem:[#allocation3 + $0x44] ss:$8 sps:$4 sm:$0xff]   ;;  %v5767_v63 = vld [vmem:[#allocation3 + $0x34] ss:$8 sps:$4 sm:$0xff]  }
 0x1df   : > { %v1101_v0 = vpop.f32.mrf.mxu0 }
 0x1e0   : > { %v1113_v1 = vpack.c.bf16 %v1101_v0, %v1098_v62  ;;  %5631 = vmatpush3.bf16.msra.mxu1 %v5741_v61  ;;  %v5759_v61 = vld [vmem:[#allocation3 + $0x40] ss:$8 sps:$4 sm:$0xff]   ;;  %v5764_v62 = vld [vmem:[#allocation3 + $0xa4] ss:$8 sps:$4 sm:$0xff]  }
 0x1e1   : > { %5644 = vmatprep.subr.bf16.mxu1 %v6205_v3  ;;  %v5762_v0 = vld [vmem:[#allocation3 + $0xa0] ss:$8 sps:$4 sm:$0xff]  }
 0x1e2   : > { %5632 = vmatprep.mubr.msk.bf16.mxu1 %vm462_vm1, %v1113_v1  ;;  %v5765_v1 = vld [vmem:[#allocation3 + $0x30] ss:$8 sps:$4 sm:$0xff]  }
 0x1e3   : > { %5633 = vmatmul.mubr.msk.bf16.vlgmr.msra.gmra.mxu1 %vm462_vm1, %v1114_v2  ;;  %v5770_v2 = vld [vmem:[#allocation3 + $0x94] ss:$8 sps:$4 sm:$0xff]  }
 0x1e4   : > { %5648 = vmatprep.mubr.msk.bf16.mxu1 %vm6206_vm2, %v6205_v3 }
 0x293   : > { %v5602_v8 = vpop.f32.mrf.mxu1 }
 0x294   : > { %v891_v17 = vadd.f32 %v5602_v8, %v737_v14  ;;  %v5779_v8 = vld [vmem:[#allocation3 + $0x14] ss:$8 sps:$4 sm:$0xff]   ;;  %v5783_v14 = vld [vmem:[#allocation3] ss:$8 sps:$4 sm:$0xff]  }
 0x295   : > { %v874_v9 = vpop.f32.mrf.mxu1 }
 0x296   : > { %v889_v20 = vadd.f32 %v874_v9, %v729_v16  ;;  %v5774_v9 = vld [vmem:[#allocation3 + $0x80] ss:$8 sps:$4 sm:$0xff]   ;;  %v5790_v16 = vld [vmem:[#allocation3 + $0x144] ss:$8 sps:$4 sm:$0xff]  }
 0x297   : > { %v5603_v10 = vpop.f32.mrf.mxu1 }
 0x298   : > { %v892_v24 = vadd.f32 %v5603_v10, %v740_v19  ;;  %v5777_v10 = vld [vmem:[#allocation3 + $0x10] ss:$8 sps:$4 sm:$0xff]  }
 0x299   : > { %v877_v11 = vpop.f32.mrf.mxu1 }
 0x29a   : > { %v890_v29 = vadd.f32 %v877_v11, %v732_v23  ;;  %v5782_v11 = vld [vmem:[#allocation3 + $0x74] ss:$8 sps:$4 sm:$0xff]  }
 0x29b   : > { %v5618_v12 = vpop.f32.mrf.mxu1 }
 0x29c   : > { %v1041_v21 = vadd.f32 %v5618_v12, %v891_v17  ;;  %v5780_v12 = vld [vmem:[#allocation3 + $0x70] ss:$8 sps:$4 sm:$0xff]  }
 0x29d   : > { %v1024_v13 = vpop.f32.mrf.mxu1 }
 0x29e   : > { %v1039_v25 = vadd.f32 %v1024_v13, %v889_v20  ;;  %v5785_v13 = vld [vmem:[#allocation3 + $0x4] ss:$8 sps:$4 sm:$0xff]  }
 0x29f   : > { %v5619_v15 = vpop.f32.mrf.mxu1 }
 0x2a0   : > { %v1042_v30 = vadd.f32 %v5619_v15, %v892_v24  ;;  %v6207_v15 = vmov 0  }
 0x2a1   : > { %v1027_v18 = vpop.f32.mrf.mxu1 }
 0x2a2   : > { %v1040_v33 = vadd.f32 %v1027_v18, %v890_v29  ;;  %v5791_v29 = vld [vmem:[#allocation3 + $0x130] ss:$8 sps:$4 sm:$0xff]  }
 0x2a3   : > { %v5634_v22 = vpop.f32.mrf.mxu1 }
 0x2a4   : > { %v1191_v26 = vadd.f32 %v5634_v22, %v1041_v21 }
 0x2a5   : > { %v1174_v28 = vpop.f32.mrf.mxu1 }
 0x2a6   : > { %v1189_v31 = vadd.f32 %v1174_v28, %v1039_v25  ;;  %v1201_v34 = vadd.f32 %v4849_v27, %v1191_v26  ;;  %v5788_v25 = vld [vmem:[#allocation3 + $0x140] ss:$8 sps:$4 sm:$0xff]   ;;  %v5793_v28 = vld [vmem:[#allocation3 + $0x134] ss:$8 sps:$4 sm:$0xff]  }
 0x2a7   : > { %v5635_v32 = vpop.f32.mrf.mxu1 }
 0x2a8   : > { %v1192_v35 = vadd.f32 %v5635_v32, %v1042_v30  ;;  %v1199_v37 = vadd.f32 %v4849_v27, %v1189_v31  ;;  %v1205_v40 = vmax.f32 %v1201_v34, 0.0  ;;  %v5796_v30 = vld [vmem:[#allocation3 + $0x124] ss:$8 sps:$4 sm:$0xff]   ;;  %v5794_v32 = vld [vmem:[#allocation3 + $0x120] ss:$8 sps:$4 sm:$0xff]  }
 0x2a9   : > { %v1177_v36 = vpop.f32.mrf.mxu1  ;;  %v5786_v31 = vld [vmem:[%s7445_s4 + $0x10] sm:$0x7f]  }
 0x2aa   : > { %v1202_v38 = vadd.f32 %v4849_v27, %v1192_v35  ;;  %v1190_v39 = vadd.f32 %v1177_v36, %v1040_v33  ;;  %v1203_v43 = vmax.f32 %v1199_v37, 0.0  ;;  %v5802_v33 = vld [vmem:[#allocation3 + $0x114] ss:$8 sps:$4 sm:$0xff]   ;;  %v5800_v35 = vld [vmem:[#allocation3 + $0x110] ss:$8 sps:$4 sm:$0xff]  }
 0x2ab   : > { %v5799_v34 = vld [vmem:[#allocation3 + $0x1b4] ss:$8 sps:$4 sm:$0xff]   ;;  %v5797_v37 = vld [vmem:[#allocation3 + $0x1b0] ss:$8 sps:$4 sm:$0xff]  }
 0x2ac   : > { %v1206_v41 = vmax.f32 %v1202_v38, 0.0  ;;  %v1200_v42 = vadd.f32 %v4849_v27, %v1190_v39  ;;  %v5787_v36 = vld [vmem:[%s7445_s4 + $0x18] sm:$0x7f]   ;;  %v5805_v38 = vld [vmem:[#allocation3 + $0x1a4] ss:$8 sps:$4 sm:$0xff]  }
 0x2ad   : > { %v5803_v39 = vld [vmem:[#allocation3 + $0x1a0] ss:$8 sps:$4 sm:$0xff]  }
 0x2ae   : > { %v1208_v44 = vpack.c.bf16 %v1206_v41, %v1205_v40  ;;  %v1204_v45 = vmax.f32 %v1200_v42, 0.0  ;;  %v5808_v40 = vld [vmem:[#allocation3 + $0x104] ss:$8 sps:$4 sm:$0xff]   ;;  %v5806_v41 = vld [vmem:[#allocation3 + $0x100] ss:$8 sps:$4 sm:$0xff]  }
 0x2af   : > { %v5811_v42 = vld [vmem:[#allocation3 + $0x194] ss:$8 sps:$4 sm:$0xff]  }
 0x2b0   : > { %v6436_v46 = vpack.c.bf16 %v1204_v45, %v1203_v43  ;;  %v6439_v47 = vsel %vm469_vm0, %v1208_v44, 0  ;;  %v5809_v43 = vld [vmem:[#allocation3 + $0x190] ss:$8 sps:$4 sm:$0xff]   ;;  %v5814_v44 = vld [vmem:[#allocation3 + $0xf4] ss:$8 sps:$4 sm:$0xff]  }
 0x2b1   : > { %5637 = vmatpush3.bf16.msra.mxu0 %v6439_v47  ;;  %5645 = vmatpush3.bf16.msra.mxu1 %v6439_v47  ;;  %v5812_v45 = vld [vmem:[#allocation3 + $0xf0] ss:$8 sps:$4 sm:$0xff]  }
 0x2b2   : > { %5638 = vmatprep.subr.bf16.mxu0 %v6205_v3  ;;  %5646 = vmatprep.subr.bf16.mxu1 %v6205_v3 }
 0x2b5   : > { %5639 = vmatpush3.bf16.msra.mxu0 %v6436_v46  ;;  %5647 = vmatpush3.bf16.msra.mxu1 %v6436_v46 }
 0x2b6   : > { %1422 = vmatprep.subr.bf16.mxu0 %v5746_v48  ;;  %1538 = vmatprep.subr.bf16.mxu1 %v5749_v49  ;;  %v5817_v48 = vld [vmem:[#allocation3 + $0x184] ss:$8 sps:$4 sm:$0xff]   ;;  %v5815_v49 = vld [vmem:[#allocation3 + $0x180] ss:$8 sps:$4 sm:$0xff]  }
 0x2b8   : > { %5641 = vmatmul.mubr.msk.bf16.vlgmr.msra.gmra.mxu0 %vm462_vm1, %v5742_v50  ;;  %5649 = vmatmul.mubr.msk.bf16.vlgmr.msra.gmra.mxu1 %vm462_vm1, %v5743_v51  ;;  %v5820_v50 = vld [vmem:[#allocation3 + $0xe4] ss:$8 sps:$4 sm:$0xff]   ;;  %v5818_v51 = vld [vmem:[#allocation3 + $0xe0] ss:$8 sps:$4 sm:$0xff]  }
 0x2b9   : > { %1423 = vmatpush1.bf16.msra.mxu0 %v5744_v52  ;;  %1539 = vmatpush1.bf16.msra.mxu1 %v5747_v53  ;;  %v5821_v52 = vld [vmem:[#allocation3 + $0x170] ss:$8 sps:$4 sm:$0xff]   ;;  %v5823_v53 = vld [vmem:[#allocation3 + $0x174] ss:$8 sps:$4 sm:$0xff]  }
 0x2ba   : > { %1424 = vmatprep.subr.bf16.mxu0 %v5752_v54  ;;  %1540 = vmatprep.subr.bf16.mxu1 %v5755_v55  ;;  %v5826_v54 = vld [vmem:[#allocation3 + $0x164] ss:$8 sps:$4 sm:$0xff]   ;;  %v5824_v55 = vld [vmem:[#allocation3 + $0x160] ss:$8 sps:$4 sm:$0xff]  }
 0x2bb   : > { %1452 = vmatprep.mubr.bf16.mxu0 %v6207_v15  ;;  %1568 = vmatprep.mubr.bf16.mxu1 %v6207_v15 }
 0x2bd   : > { %1425 = vmatpush1.bf16.msra.mxu0 %v5750_v56  ;;  %1541 = vmatpush1.bf16.msra.mxu1 %v5753_v57  ;;  %v5827_v56 = vld [vmem:[#allocation3 + $0x150] ss:$8 sps:$4 sm:$0xff]   ;;  %v5829_v57 = vld [vmem:[#allocation3 + $0x154] ss:$8 sps:$4 sm:$0xff]  }
 0x2be   : > { %1426 = vmatprep.subr.bf16.mxu0 %v5758_v58  ;;  %1542 = vmatprep.subr.bf16.mxu1 %v5761_v59 }
 0x2c1   : > { %1427 = vmatpush1.bf16.msra.mxu0 %v5756_v60  ;;  %1543 = vmatpush1.bf16.msra.mxu1 %v5759_v61 }
 0x2c2   : > { %1428 = vmatprep.subr.bf16.mxu0 %v5764_v62  ;;  %1544 = vmatprep.subr.bf16.mxu1 %v5767_v63 }
 0x2c5   : > { %1429 = vmatpush1.bf16.msra.mxu0 %v5762_v0  ;;  %1545 = vmatpush1.bf16.msra.mxu1 %v5765_v1 }
 0x2c6   : > { %1430 = vmatprep.subr.bf16.mxu0 %v5770_v2  ;;  %1546 = vmatprep.subr.bf16.mxu1 %v5773_v4 }
 0x2c9   : > { %1431 = vmatpush1.bf16.msra.mxu0 %v5768_v5  ;;  %1547 = vmatpush1.bf16.msra.mxu1 %v5771_v6 }
 0x2ca   : > { %1432 = vmatprep.subr.bf16.mxu0 %v5776_v7  ;;  %1548 = vmatprep.subr.bf16.mxu1 %v5779_v8 }
 0x2cd   : > { %1433 = vmatpush1.bf16.msra.mxu0 %v5774_v9  ;;  %1549 = vmatpush1.bf16.msra.mxu1 %v5777_v10 }
 0x2ce   : > { %1434 = vmatprep.subr.bf16.mxu0 %v5782_v11  ;;  %1550 = vmatprep.subr.bf16.mxu1 %v5785_v13  ;;  %v5833_v11 = vld [vmem:[#allocation3 + $0x224] ss:$8 sps:$4 sm:$0xff]  }
 0x2cf   : > { %v5830_v13 = vld [vmem:[%s7445_s4 + $0x20] sm:$0x7f]  }
 0x2d1   : > { %1435 = vmatpush1.bf16.msra.mxu0 %v5780_v12  ;;  %1551 = vmatpush1.bf16.msra.mxu1 %v5783_v14 }
 0x2d2   : > { %5652 = vmatprep.subr.bf16.mxu0 %v6205_v3  ;;  %1722 = vmatprep.subr.bf16.mxu1 %v5790_v16  ;;  %v5831_v16 = vld [vmem:[#allocation3 + $0x220] ss:$8 sps:$4 sm:$0xff]  }
 0x378   : > { %v1256_v17 = vpop.f32.mrf.mxu0  ;;  %v1323_v18 = vpop.f32.mrf.mxu1 }
 0x37a   : > { %v5642_v19 = vpop.f32.mrf.mxu0  ;;  %v5650_v20 = vpop.f32.mrf.mxu1 }
 0x37b   : > { %v5834_v19 = vld [vmem:[#allocation3 + $0x210] ss:$8 sps:$4 sm:$0xff]   ;;  %v5839_v20 = vld [vmem:[#allocation3 + $0x204] ss:$8 sps:$4 sm:$0xff]  }
 0x37c   : > { %v1259_v21 = vpop.f32.mrf.mxu0  ;;  %v1326_v22 = vpop.f32.mrf.mxu1 }
 0x37d   : > { %v1263_v23 = vpack.c.bf16 %v1259_v21, %v1256_v17  ;;  %v1330_v24 = vpack.c.bf16 %v1326_v22, %v1323_v18  ;;  %v5836_v18 = vld [vmem:[#allocation3 + $0x214] ss:$8 sps:$4 sm:$0xff]   ;;  %v5840_v22 = vld [vmem:[#allocation3 + $0x1f0] ss:$8 sps:$4 sm:$0xff]  }
 0x37e   : > { %v5651_v26 = vpop.f32.mrf.mxu1  ;;  %v5643_v27 = vpop.f32.mrf.mxu0  ;;  %v5842_v21 = vld [vmem:[#allocation3 + $0x1f4] ss:$8 sps:$4 sm:$0xff]  }
 0x37f   : > { %4870 = vmatmul.mubr.msk.bf16.vlgmr.msra.gmra.mxu0 %vm1416_vm3, %v1330_v24  ;;  %4885 = vmatmul.mubr.msk.bf16.vlgmr.msra.gmra.mxu1 %vm1416_vm3, %v1263_v23  ;;  %v5845_v23 = vld [vmem:[#allocation3 + $0x1e4] ss:$8 sps:$4 sm:$0xff]   ;;  %v5843_v24 = vld [vmem:[#allocation3 + $0x1e0] ss:$8 sps:$4 sm:$0xff]   ;;  %v5846_v26 = vld [vmem:[#allocation3 + $0x1d0] ss:$8 sps:$4 sm:$0xff]  }
 0x380   : > { %5653 = vmatpush3.bf16.msra.mxu0 %v6439_v47  ;;  %5656 = vmatprep.mubr.msk.bf16.mxu0 %vm6206_vm2, %v6205_v3  ;;  %v5851_v27 = vld [vmem:[#allocation3 + $0x1c4] ss:$8 sps:$4 sm:$0xff]  }
 0x381   : > { %5654 = vmatprep.subr.bf16.mxu0 %v6205_v3  ;;  %1723 = vmatpush1.bf16.msra.mxu1 %v5788_v25  ;;  %v5848_v25 = vld [vmem:[#allocation3 + $0x1d4] ss:$8 sps:$4 sm:$0xff]  }
 0x382   : > { %1724 = vmatprep.subr.bf16.mxu1 %v5793_v28  ;;  %1752 = vmatprep.mubr.bf16.mxu1 %v6207_v15  ;;  %v5849_v28 = vld [vmem:[#allocation3 + $0x1c0] ss:$8 sps:$4 sm:$0xff]  }
 0x384   : > { %5655 = vmatpush3.bf16.msra.mxu0 %v6436_v46 }
 0x385   : > { %5660 = vmatprep.subr.bf16.mxu0 %v6205_v3  ;;  %1725 = vmatpush1.bf16.msra.mxu1 %v5791_v29 }
 0x386   : > { %1726 = vmatprep.subr.bf16.mxu1 %v5796_v30 }
 0x387   : > { %5657 = vmatmul.mubr.msk.bf16.vlgmr.msra.gmra.mxu0 %vm462_vm1, %v5786_v31 }
 0x388   : > { %5661 = vmatpush3.bf16.msra.mxu0 %v6439_v47  ;;  %5664 = vmatprep.mubr.msk.bf16.mxu0 %vm6206_vm2, %v6205_v3 }
 0x389   : > { %5662 = vmatprep.subr.bf16.mxu0 %v6205_v3  ;;  %1727 = vmatpush1.bf16.msra.mxu1 %v5794_v32 }
 0x38a   : > { %1728 = vmatprep.subr.bf16.mxu1 %v5802_v33 }
 0x38c   : > { %5663 = vmatpush3.bf16.msra.mxu0 %v6436_v46 }
 0x38d   : > { %1910 = vmatprep.subr.bf16.mxu0 %v5799_v34  ;;  %1729 = vmatpush1.bf16.msra.mxu1 %v5800_v35 }
 0x38e   : > { %1730 = vmatprep.subr.bf16.mxu1 %v5808_v40 }
 0x38f   : > { %5665 = vmatmul.mubr.msk.bf16.vlgmr.msra.gmra.mxu0 %vm462_vm1, %v5787_v36 }
 0x390   : > { %1911 = vmatpush1.bf16.msra.mxu0 %v5797_v37  ;;  %1940 = vmatprep.mubr.bf16.mxu0 %v6207_v15 }
 0x391   : > { %1912 = vmatprep.subr.bf16.mxu0 %v5805_v38  ;;  %1731 = vmatpush1.bf16.msra.mxu1 %v5806_v41 }
 0x392   : > { %1732 = vmatprep.subr.bf16.mxu1 %v5814_v44  ;;  %v5894_v44 = vld [vmem:[%s7448_s7 + $0x70] ss:$8 sps:$4 sm:$0xff]  }
 0x394   : > { %1913 = vmatpush1.bf16.msra.mxu0 %v5803_v39 }
 0x395   : > { %1914 = vmatprep.subr.bf16.mxu0 %v5811_v42  ;;  %1733 = vmatpush1.bf16.msra.mxu1 %v5812_v45  ;;  %v5896_v45 = vld [vmem:[%s7448_s7 + $0x74] ss:$8 sps:$4 sm:$0xff]  }
 0x396   : > { %1734 = vmatprep.subr.bf16.mxu1 %v5820_v50  ;;  %v5902_v50 = vld [vmem:[%s7448_s7 + $0x54] ss:$8 sps:$4 sm:$0xff]  }
 0x398   : > { %1915 = vmatpush1.bf16.msra.mxu0 %v5809_v43 }
 0x399   : > { %1916 = vmatprep.subr.bf16.mxu0 %v5817_v48  ;;  %1735 = vmatpush1.bf16.msra.mxu1 %v5818_v51  ;;  %v5899_v48 = vld [vmem:[%s7448_s7 + $0x64] ss:$8 sps:$4 sm:$0xff]   ;;  %v5900_v51 = vld [vmem:[%s7448_s7 + $0x50] ss:$8 sps:$4 sm:$0xff]  }
 0x39a   : > { %5668 = vmatprep.subr.bf16.mxu1 %v6205_v3 }
 0x39c   : > { %1917 = vmatpush1.bf16.msra.mxu0 %v5815_v49  ;;  %v5897_v49 = vld [vmem:[%s7448_s7 + $0x60] ss:$8 sps:$4 sm:$0xff]  }
 0x39d   : > { %1918 = vmatprep.subr.bf16.mxu0 %v5823_v53  ;;  %v5903_v53 = vld [vmem:[%s7448_s7 + $0x40] ss:$8 sps:$4 sm:$0xff]  }
 0x3a0   : > { %1919 = vmatpush1.bf16.msra.mxu0 %v5821_v52  ;;  %v5905_v52 = vld [vmem:[%s7448_s7 + $0x44] ss:$8 sps:$4 sm:$0xff]  }
 0x3a1   : > { %1920 = vmatprep.subr.bf16.mxu0 %v5826_v54  ;;  %v5908_v54 = vld [vmem:[%s7448_s7 + $0x34] ss:$8 sps:$4 sm:$0xff]  }
 0x3a4   : > { %1921 = vmatpush1.bf16.msra.mxu0 %v5824_v55  ;;  %v5906_v55 = vld [vmem:[%s7448_s7 + $0x30] ss:$8 sps:$4 sm:$0xff]  }
 0x3a5   : > { %1922 = vmatprep.subr.bf16.mxu0 %v5829_v57  ;;  %v5909_v57 = vld [vmem:[%s7448_s7 + $0x20] ss:$8 sps:$4 sm:$0xff]  }
 0x3a8   : > { %1923 = vmatpush1.bf16.msra.mxu0 %v5827_v56  ;;  %v5911_v56 = vld [vmem:[%s7448_s7 + $0x24] ss:$8 sps:$4 sm:$0xff]  }
 0x43f   : > { %v1454_v58 = vpop.f32.mrf.mxu0  ;;  %v1570_v59 = vpop.f32.mrf.mxu1 }
 0x440   : > { %v1571_v60 = vadd.f32 %v1570_v59, %v1454_v58  ;;  %v5914_v58 = vld [vmem:[%s7448_s7 + $0x14] ss:$8 sps:$4 sm:$0xff]   ;;  %v5912_v59 = vld [vmem:[%s7448_s7 + $0x10] ss:$8 sps:$4 sm:$0xff]  }
 0x441   : > { %v1456_v61 = vpop.f32.mrf.mxu0  ;;  %v1572_v62 = vpop.f32.mrf.mxu1 }
 0x442   : > { %v1573_v63 = vadd.f32 %v1572_v62, %v1456_v61  ;;  %v5915_v61 = vld [vmem:[%s7448_s7] ss:$8 sps:$4 sm:$0xff]   ;;  %v5920_v62 = vld [vmem:[%s7448_s7 + $0xd4] ss:$8 sps:$4 sm:$0xff]  }
 0x443   : > { %v1458_v0 = vpop.f32.mrf.mxu0  ;;  %v1574_v1 = vpop.f32.mrf.mxu1 }
 0x444   : > { %v1575_v2 = vadd.f32 %v1574_v1, %v1458_v0  ;;  %v5923_v0 = vld [vmem:[%s7448_s7 + $0xc4] ss:$8 sps:$4 sm:$0xff]   ;;  %v5921_v1 = vld [vmem:[%s7448_s7 + $0xc0] ss:$8 sps:$4 sm:$0xff]  }
 0x445   : > { %v1460_v4 = vpop.f32.mrf.mxu0  ;;  %v1576_v29 = vpop.f32.mrf.mxu1 }
 0x446   : > { %v1577_v35 = vadd.f32 %v1576_v29, %v1460_v4 }
 0x447   : > { %v1624_v5 = vpop.f32.mrf.mxu0 }
 0x449   : > { %v5658_v6 = vpop.f32.mrf.mxu0 }
 0x44a   : > { %v5929_v6 = vld [vmem:[%s7448_s7 + $0xa4] ss:$8 sps:$4 sm:$0xff]  }
 0x44b   : > { %v1627_v7 = vpop.f32.mrf.mxu0 }
 0x44c   : > { %v1631_v8 = vpack.c.bf16 %v1627_v7, %v1624_v5  ;;  %v5924_v5 = vld [vmem:[%s7448_s7 + $0xb0] ss:$8 sps:$4 sm:$0xff]  }
 0x44d   : > { %v5659_v9 = vpop.f32.mrf.mxu0 }
 0x44e   : > { %4904 = vmatmul.mubr.msk.bf16.vlgmr.msra.gmra.mxu1 %vm1416_vm3, %v1631_v8  ;;  %v5927_v8 = vld [vmem:[%s7448_s7 + $0xa0] ss:$8 sps:$4 sm:$0xff]   ;;  %v5932_v9 = vld [vmem:[%s7448_s7 + $0x94] ss:$8 sps:$4 sm:$0xff]  }
 0x44f   : > { %5669 = vmatpush3.bf16.msra.mxu1 %v6439_v47  ;;  %v1812_v10 = vpop.f32.mrf.mxu0  ;;  %5672 = vmatprep.mubr.msk.bf16.mxu1 %vm6206_vm2, %v6205_v3 }
 0x450   : > { %5670 = vmatprep.subr.bf16.mxu1 %v6205_v3 }
 0x451   : > { %v5666_v12 = vpop.f32.mrf.mxu0 }
 0x453   : > { %5671 = vmatpush3.bf16.msra.mxu1 %v6436_v46  ;;  %v1815_v14 = vpop.f32.mrf.mxu0  ;;  %v5837_v46 = vld [vmem:[#allocation3 + $0x200] ss:$8 sps:$4 sm:$0xff]  }
 0x454   : > { %v1819_v17 = vpack.c.bf16 %v1815_v14, %v1812_v10  ;;  %2098 = vmatprep.subr.bf16.mxu1 %v5833_v11  ;;  %v5930_v11 = vld [vmem:[%s7448_s7 + $0x90] ss:$8 sps:$4 sm:$0xff]  }
 0x455   : > { %v5667_v47 = vpop.f32.mrf.mxu0 }
 0x456   : > { %4923 = vmatmul.mubr.msk.bf16.vlgmr.msra.gmra.mxu0 %vm1416_vm3, %v1819_v17  ;;  %5673 = vmatmul.mubr.msk.bf16.vlgmr.msra.gmra.mxu1 %vm462_vm1, %v5830_v13 }
 0x457   : > { %2099 = vmatpush1.bf16.msra.mxu1 %v5831_v16  ;;  %2128 = vmatprep.mubr.bf16.mxu1 %v6207_v15 }
 0x458   : > { %2100 = vmatprep.subr.bf16.mxu1 %v5836_v18  ;;  %2193 = vmatprep.mubr.bf16.mxu0 %v6207_v15 }
 0x45b   : > { %2101 = vmatpush1.bf16.msra.mxu1 %v5834_v19 }
 0x45c   : > { %2102 = vmatprep.subr.bf16.mxu1 %v5839_v20 }
 0x45f   : > { %2103 = vmatpush1.bf16.msra.mxu1 %v5837_v46 }
 0x460   : > { %2104 = vmatprep.subr.bf16.mxu1 %v5842_v21 }
 0x463   : > { %2105 = vmatpush1.bf16.msra.mxu1 %v5840_v22 }
 0x464   : > { %2106 = vmatprep.subr.bf16.mxu1 %v5845_v23 }
 0x467   : > { %2107 = vmatpush1.bf16.msra.mxu1 %v5843_v24 }
 0x468   : > { %2108 = vmatprep.subr.bf16.mxu1 %v5848_v25 }
 0x46b   : > { %2109 = vmatpush1.bf16.msra.mxu1 %v5846_v26 }
 0x46c   : > { %2110 = vmatprep.subr.bf16.mxu1 %v5851_v27 }
 0x46f   : > { %2111 = vmatpush1.bf16.msra.mxu1 %v5849_v28 }
 0x470   : > { %2637 = vmatprep.subr.bf16.mxu1 %v5896_v45  ;;  %v5872_v45 = vld [vmem:[%s7448_s7 + $0xf4] ss:$8 sps:$4 sm:$0xff]  }
 0x50e   : > { %v1754_v30 = vpop.f32.mrf.mxu1 }
 0x50f   : > { %v6495_v31 = vadd.f32 %v1754_v30, %v1571_v60  ;;  %v5917_v60 = vld [vmem:[%s7448_s7 + $0x4] ss:$8 sps:$4 sm:$0xff]  }
 0x510   : > { %v1756_v32 = vpop.f32.mrf.mxu1 }
 0x511   : > { %v6497_v33 = vadd.f32 %v1756_v32, %v1573_v63  ;;  %v5918_v63 = vld [vmem:[%s7448_s7 + $0xd0] ss:$8 sps:$4 sm:$0xff]   ;;  %v5854_v32 = vld [vmem:[%s7448_s7 + $0x154] ss:$8 sps:$4 sm:$0xff]  }
 0x512   : > { %v1758_v34 = vpop.f32.mrf.mxu1 }
 0x513   : > { %v6499_v36 = vadd.f32 %v1758_v34, %v1575_v2  ;;  %v5926_v2 = vld [vmem:[%s7448_s7 + $0xb4] ss:$8 sps:$4 sm:$0xff]   ;;  %v4945_v34 = vld [vmem:[%s7447_s6 + $0x4] sm:$0xf] }
 0x514   : > { %v1760_v37 = vpop.f32.mrf.mxu1 }
 0x515   : > { %v6501_v38 = vadd.f32 %v1760_v37, %v1577_v35  ;;  %v5857_v35 = vld [vmem:[%s7448_s7 + $0x144] ss:$8 sps:$4 sm:$0xff]   ;;  %v5860_v37 = vld [vmem:[%s7448_s7 + $0x134] ss:$8 sps:$4 sm:$0xff]  }
 0x516   : > { %v2000_v39 = vpop.f32.mrf.mxu1  ;;  %v1942_v4 = vpop.f32.mrf.mxu0 }
 0x517   : > { %v1951_v13 = vadd.f32 %v1942_v4, %v6495_v31  ;;  %v2149_v31 = vld [vmem:[%s7447_s6] sm:$0xf] }
 0x518   : > { %v5674_v40 = vpop.f32.mrf.mxu1  ;;  %v1944_v7 = vpop.f32.mrf.mxu0 }
 0x519   : > { %v1952_v17 = vadd.f32 %v1944_v7, %v6497_v33  ;;  %v5852_v33 = vld [vmem:[%s7448_s7 + $0x150] ss:$8 sps:$4 sm:$0xff]   ;;  %v5861_v40 = vld [vmem:[%s7448_s7 + $0x120] ss:$8 sps:$4 sm:$0xff]  }
 0x51a   : > { %v2003_v41 = vpop.f32.mrf.mxu1  ;;  %v1946_v10 = vpop.f32.mrf.mxu0 }
 0x51b   : > { %v2007_v42 = vpack.c.bf16 %v2003_v41, %v2000_v39  ;;  %v1953_v18 = vadd.f32 %v1946_v10, %v6499_v36  ;;  %v5855_v36 = vld [vmem:[%s7448_s7 + $0x140] ss:$8 sps:$4 sm:$0xff]   ;;  %v5863_v39 = vld [vmem:[%s7448_s7 + $0x124] ss:$8 sps:$4 sm:$0xff]   ;;  %v5866_v41 = vld [vmem:[%s7448_s7 + $0x114] ss:$8 sps:$4 sm:$0xff]  }
 0x51c   : > { %v5675_v43 = vpop.f32.mrf.mxu1  ;;  %v1948_v14 = vpop.f32.mrf.mxu0 }
 0x51d   : > { %4942 = vmatmul.mubr.msk.bf16.vlgmr.msra.gmra.mxu1 %vm1416_vm3, %v2007_v42  ;;  %v1954_v20 = vadd.f32 %v1948_v14, %v6501_v38  ;;  %v5858_v38 = vld [vmem:[%s7448_s7 + $0x130] ss:$8 sps:$4 sm:$0xff]   ;;  %v5869_v43 = vld [vmem:[%s7448_s7 + $0x104] ss:$8 sps:$4 sm:$0xff]  }
 0x51e   : > { %2638 = vmatpush1.bf16.msra.mxu1 %v5894_v44  ;;  %v5864_v42 = vld [vmem:[%s7448_s7 + $0x110] ss:$8 sps:$4 sm:$0xff]   ;;  %v5867_v44 = vld [vmem:[%s7448_s7 + $0x100] ss:$8 sps:$4 sm:$0xff]  }
 0x51f   : > { %2639 = vmatprep.subr.bf16.mxu1 %v5899_v48  ;;  %v5870_v48 = vld [vmem:[%s7448_s7 + $0xf0] ss:$8 sps:$4 sm:$0xff]  }
 0x522   : > { %2640 = vmatpush1.bf16.msra.mxu1 %v5897_v49  ;;  %v5875_v49 = vld [vmem:[%s7448_s7 + $0xe4] ss:$8 sps:$4 sm:$0xff]  }
 0x523   : > { %2641 = vmatprep.subr.bf16.mxu1 %v5902_v50  ;;  %v5873_v50 = vld [vmem:[%s7448_s7 + $0xe0] ss:$8 sps:$4 sm:$0xff]  }
 0x526   : > { %2642 = vmatpush1.bf16.msra.mxu1 %v5900_v51  ;;  %v5878_v51 = vld [vmem:[%s7448_s7 + $0x1b4] ss:$8 sps:$4 sm:$0xff]  }
 0x527   : > { %2643 = vmatprep.subr.bf16.mxu1 %v5905_v52  ;;  %v5876_v52 = vld [vmem:[%s7448_s7 + $0x1b0] ss:$8 sps:$4 sm:$0xff]  }
 0x52a   : > { %2644 = vmatpush1.bf16.msra.mxu1 %v5903_v53  ;;  %v5881_v53 = vld [vmem:[%s7448_s7 + $0x1a4] ss:$8 sps:$4 sm:$0xff]  }
 0x52b   : > { %2645 = vmatprep.subr.bf16.mxu1 %v5908_v54  ;;  %v5879_v54 = vld [vmem:[%s7448_s7 + $0x1a0] ss:$8 sps:$4 sm:$0xff]  }
 0x52e   : > { %2646 = vmatpush1.bf16.msra.mxu1 %v5906_v55  ;;  %v5884_v55 = vld [vmem:[%s7448_s7 + $0x194] ss:$8 sps:$4 sm:$0xff]  }
 0x52f   : > { %2647 = vmatprep.subr.bf16.mxu1 %v5911_v56  ;;  %v5882_v56 = vld [vmem:[%s7448_s7 + $0x190] ss:$8 sps:$4 sm:$0xff]  }
 0x532   : > { %2648 = vmatpush1.bf16.msra.mxu1 %v5909_v57  ;;  %v5887_v57 = vld [vmem:[%s7448_s7 + $0x184] ss:$8 sps:$4 sm:$0xff]  }
 0x533   : > { %2649 = vmatprep.subr.bf16.mxu1 %v5914_v58  ;;  %v5885_v58 = vld [vmem:[%s7448_s7 + $0x180] ss:$8 sps:$4 sm:$0xff]  }
 0x536   : > { %2650 = vmatpush1.bf16.msra.mxu1 %v5912_v59  ;;  %v5890_v59 = vld [vmem:[%s7448_s7 + $0x174] ss:$8 sps:$4 sm:$0xff]  }
 0x537   : > { %2651 = vmatprep.subr.bf16.mxu1 %v5917_v60  ;;  %v5888_v60 = vld [vmem:[%s7448_s7 + $0x170] ss:$8 sps:$4 sm:$0xff]  }
 0x53a   : > { %2652 = vmatpush1.bf16.msra.mxu1 %v5915_v61  ;;  %v5893_v61 = vld [vmem:[%s7448_s7 + $0x164] ss:$8 sps:$4 sm:$0xff]  }
 0x53b   : > { %2657 = vmatprep.subr.bf16.mxu1 %v5920_v62  ;;  %v5891_v62 = vld [vmem:[%s7448_s7 + $0x160] ss:$8 sps:$4 sm:$0xff]  }
 0x53e   : > { %2658 = vmatpush2.bf16.msra.mxu1 %v5918_v63  ;;  %v5935_v63 = vld [vmem:[%s7448_s7 + $0x84] ss:$8 sps:$4 sm:$0xff]  }
 0x53f   : > { %2659 = vmatprep.subr.bf16.mxu1 %v5923_v0  ;;  %v5933_v0 = vld [vmem:[%s7448_s7 + $0x80] ss:$8 sps:$4 sm:$0xff]  }
 0x542   : > { %2660 = vmatpush2.bf16.msra.mxu1 %v5921_v1  ;;  %v5938_v1 = vld [vmem:[%s7448_s7 + $0x234] ss:$8 sps:$4 sm:$0xff]  }
 0x543   : > { %2661 = vmatprep.subr.bf16.mxu1 %v5926_v2 }
 0x546   : > { %2662 = vmatpush2.bf16.msra.mxu1 %v5924_v5 }
 0x547   : > { %2663 = vmatprep.subr.bf16.mxu1 %v5929_v6  ;;  %v5936_v6 = vld [vmem:[%s7448_s7 + $0x230] ss:$8 sps:$4 sm:$0xff]  }
 0x54a   : > { %2664 = vmatpush2.bf16.msra.mxu1 %v5927_v8 }
 0x54b   : > { %2665 = vmatprep.subr.bf16.mxu1 %v5932_v9  ;;  %v5941_v9 = vld [vmem:[%s7448_s7 + $0x224] ss:$8 sps:$4 sm:$0xff]  }
 0x54e   : > { %2666 = vmatpush2.bf16.msra.mxu1 %v5930_v11  ;;  %v5939_v11 = vld [vmem:[%s7448_s7 + $0x220] ss:$8 sps:$4 sm:$0xff]  }
 0x54f   : > { %2667 = vmatprep.subr.bf16.mxu1 %v5935_v63  ;;  %v6004_v63 = vld [vmem:[%s7448_s7 + $0x374] ss:$8 sps:$4 sm:$0xff]  }
 0x552   : > { %2668 = vmatpush2.bf16.msra.mxu1 %v5933_v0  ;;  %v6002_v0 = vld [vmem:[%s7448_s7 + $0x370] ss:$8 sps:$4 sm:$0xff]  }
 0x553   : > { %2898 = vmatprep.subr.bf16.mxu1 %v5938_v1  ;;  %v6005_v1 = vld [vmem:[%s7448_s7 + $0x360] ss:$8 sps:$4 sm:$0xff]  }
 0x5dd   : > { %v2130_v12 = vpop.f32.mrf.mxu1 }
 0x5de   : > { %v2139_v47 = vadd.f32 %v2130_v12, %v1951_v13  ;;  %v5944_v13 = vld [vmem:[%s7448_s7 + $0x214] ss:$8 sps:$4 sm:$0xff]  }
 0x5df   : > { %v2132_v16 = vpop.f32.mrf.mxu1 }
 0x5e0   : > { %v2140_v46 = vadd.f32 %v2132_v16, %v1952_v17  ;;  %v2143_v23 = vmax.f32 %v2139_v47, 0.0  ;;  %v5942_v17 = vld [vmem:[%s7448_s7 + $0x210] ss:$8 sps:$4 sm:$0xff]  }
 0x5e1   : > { %v2134_v19 = vpop.f32.mrf.mxu1 }
 0x5e2   : > { %v2141_v21 = vadd.f32 %v2134_v19, %v1953_v18  ;;  %v2144_v26 = vmax.f32 %v2140_v46, 0.0  ;;  %v5947_v19 = vld [vmem:[%s7448_s7 + $0x204] ss:$8 sps:$4 sm:$0xff]   ;;  %v5945_v46 = vld [vmem:[%s7448_s7 + $0x200] ss:$8 sps:$4 sm:$0xff]  }
 0x5e3   : > { %v2136_v22 = vpop.f32.mrf.mxu1 }
 0x5e4   : > { %v2145_v24 = vmax.f32 %v2141_v21, 0.0  ;;  %v2142_v25 = vadd.f32 %v2136_v22, %v1954_v20  ;;  %v5950_v21 = vld [vmem:[%s7448_s7 + $0x1f4] ss:$8 sps:$4 sm:$0xff]   ;;  %v5948_v22 = vld [vmem:[%s7448_s7 + $0x1f0] ss:$8 sps:$4 sm:$0xff]  }
 0x5e6   : > { %v2147_v27 = vpack.c.bf16 %v2145_v24, %v2143_v23  ;;  %v2146_v28 = vmax.f32 %v2142_v25, 0.0  ;;  %v5034_v23 = vld [vmem:[%s7447_s6 + $0x8] sm:$0xf]  ;;  %v5953_v24 = vld [vmem:[%s7448_s7 + $0x1e4] ss:$8 sps:$4 sm:$0xff]  }
 0x5e7   : > { %v5980_v25 = vld [vmem:[%s7448_s7 + $0x314] ss:$8 sps:$4 sm:$0xff]  }
 0x5e8   : > { %v6586_v29 = vpack.c.bf16 %v2146_v28, %v2144_v26  ;;  %v6589_v30 = vsel %vm2154_vm4, %v2147_v27, 0  ;;  %v5951_v26 = vld [vmem:[%s7448_s7 + $0x1e0] ss:$8 sps:$4 sm:$0xff]   ;;  %v5956_v27 = vld [vmem:[%s7448_s7 + $0x1d4] ss:$8 sps:$4 sm:$0xff]  }
 0x5e9   : > { %v5954_v28 = vld [vmem:[%s7448_s7 + $0x1d0] ss:$8 sps:$4 sm:$0xff]  }
 0x5ea   : > { %4943 = vmatprep.subr.msk.bf16.mxu0 %vm2154_vm4, %v6586_v29 }
 0x5eb   : > { %2176 = vmatpush1.bf16.msra.mxu0 %v6589_v30 }
 0x5ec   : > { %4946 = vmatprep.subr.msk.bf16.mxu0 %vm2154_vm4, %v6586_v29 }
 0x5ee   : > { %4944 = vmatmul.mubr.msk.bf16.vlgmr.msra.gmra.mxu0 %vm2150_vm5, %v2149_v31  ;;  %v5094_v31 = vld [vmem:[%s7447_s6 + $0xc] sm:$0xf] }
 0x5ef   : > { %2252 = vmatpush1.bf16.msra.mxu0 %v6589_v30  ;;  %2269 = vmatprep.mubr.bf16.mxu0 %v6207_v15 }
 0x5f0   : > { %2453 = vmatprep.subr.bf16.mxu0 %v5854_v32  ;;  %v5978_v32 = vld [vmem:[%s7448_s7 + $0x310] ss:$8 sps:$4 sm:$0xff]  }
 0x5f6   : > { %4947 = vmatmul.mubr.msk.bf16.vlgmr.msra.gmra.mxu0 %vm2150_vm5, %v4945_v34  ;;  %v5983_v34 = vld [vmem:[%s7448_s7 + $0x304] ss:$8 sps:$4 sm:$0xff]  }
 0x5f7   : > { %2454 = vmatpush1.bf16.msra.mxu0 %v5852_v33  ;;  %v5959_v33 = vld [vmem:[%s7448_s7 + $0x1c4] ss:$8 sps:$4 sm:$0xff]  }
 0x5f8   : > { %2455 = vmatprep.subr.bf16.mxu0 %v5857_v35  ;;  %v5957_v35 = vld [vmem:[%s7448_s7 + $0x1c0] ss:$8 sps:$4 sm:$0xff]  }
 0x5fb   : > { %2456 = vmatpush1.bf16.msra.mxu0 %v5855_v36  ;;  %v5981_v36 = vld [vmem:[%s7448_s7 + $0x300] ss:$8 sps:$4 sm:$0xff]  }
 0x5fc   : > { %2457 = vmatprep.subr.bf16.mxu0 %v5860_v37  ;;  %v5962_v37 = vld [vmem:[%s7448_s7 + $0x294] ss:$8 sps:$4 sm:$0xff]  }
 0x5ff   : > { %2458 = vmatpush1.bf16.msra.mxu0 %v5858_v38  ;;  %v5986_v38 = vld [vmem:[%s7448_s7 + $0x2f4] ss:$8 sps:$4 sm:$0xff]  }
 0x600   : > { %2459 = vmatprep.subr.bf16.mxu0 %v5863_v39  ;;  %v5960_v39 = vld [vmem:[%s7448_s7 + $0x290] ss:$8 sps:$4 sm:$0xff]  }
 0x603   : > { %2460 = vmatpush1.bf16.msra.mxu0 %v5861_v40  ;;  %v5984_v40 = vld [vmem:[%s7448_s7 + $0x2f0] ss:$8 sps:$4 sm:$0xff]  }
 0x604   : > { %2461 = vmatprep.subr.bf16.mxu0 %v5866_v41  ;;  %v5965_v41 = vld [vmem:[%s7448_s7 + $0x284] ss:$8 sps:$4 sm:$0xff]  }
 0x607   : > { %2462 = vmatpush1.bf16.msra.mxu0 %v5864_v42  ;;  %v5989_v42 = vld [vmem:[%s7448_s7 + $0x2e4] ss:$8 sps:$4 sm:$0xff]  }
 0x608   : > { %2463 = vmatprep.subr.bf16.mxu0 %v5869_v43  ;;  %v5963_v43 = vld [vmem:[%s7448_s7 + $0x280] ss:$8 sps:$4 sm:$0xff]  }
 0x60b   : > { %2464 = vmatpush1.bf16.msra.mxu0 %v5867_v44  ;;  %v5987_v44 = vld [vmem:[%s7448_s7 + $0x2e0] ss:$8 sps:$4 sm:$0xff]  }
 0x60c   : > { %2465 = vmatprep.subr.bf16.mxu0 %v5872_v45  ;;  %v5968_v45 = vld [vmem:[%s7448_s7 + $0x274] ss:$8 sps:$4 sm:$0xff]  }
 0x60f   : > { %2466 = vmatpush1.bf16.msra.mxu0 %v5870_v48  ;;  %v5992_v48 = vld [vmem:[%s7448_s7 + $0x2d4] ss:$8 sps:$4 sm:$0xff]  }
 0x610   : > { %2467 = vmatprep.subr.bf16.mxu0 %v5875_v49  ;;  %v5966_v49 = vld [vmem:[%s7448_s7 + $0x270] ss:$8 sps:$4 sm:$0xff]  }
 0x613   : > { %2468 = vmatpush1.bf16.msra.mxu0 %v5873_v50  ;;  %v5990_v50 = vld [vmem:[%s7448_s7 + $0x2d0] ss:$8 sps:$4 sm:$0xff]  }
 0x614   : > { %2473 = vmatprep.subr.bf16.mxu0 %v5878_v51  ;;  %v5971_v51 = vld [vmem:[%s7448_s7 + $0x264] ss:$8 sps:$4 sm:$0xff]  }
 0x617   : > { %2474 = vmatpush2.bf16.msra.mxu0 %v5876_v52  ;;  %v5995_v52 = vld [vmem:[%s7448_s7 + $0x2c4] ss:$8 sps:$4 sm:$0xff]  }
 0x618   : > { %2475 = vmatprep.subr.bf16.mxu0 %v5881_v53  ;;  %v5969_v53 = vld [vmem:[%s7448_s7 + $0x260] ss:$8 sps:$4 sm:$0xff]  }
 0x61b   : > { %2476 = vmatpush2.bf16.msra.mxu0 %v5879_v54  ;;  %v5993_v54 = vld [vmem:[%s7448_s7 + $0x2c0] ss:$8 sps:$4 sm:$0xff]  }
 0x61c   : > { %2477 = vmatprep.subr.bf16.mxu0 %v5884_v55  ;;  %v5974_v55 = vld [vmem:[%s7448_s7 + $0x254] ss:$8 sps:$4 sm:$0xff]  }
 0x61f   : > { %2478 = vmatpush2.bf16.msra.mxu0 %v5882_v56  ;;  %v5998_v56 = vld [vmem:[%s7448_s7 + $0x2b4] ss:$8 sps:$4 sm:$0xff]  }
 0x620   : > { %2479 = vmatprep.subr.bf16.mxu0 %v5887_v57  ;;  %v5972_v57 = vld [vmem:[%s7448_s7 + $0x250] ss:$8 sps:$4 sm:$0xff]  }
 0x623   : > { %2480 = vmatpush2.bf16.msra.mxu0 %v5885_v58  ;;  %v5996_v58 = vld [vmem:[%s7448_s7 + $0x2b0] ss:$8 sps:$4 sm:$0xff]  }
 0x624   : > { %2481 = vmatprep.subr.bf16.mxu0 %v5890_v59  ;;  %v5977_v59 = vld [vmem:[%s7448_s7 + $0x244] ss:$8 sps:$4 sm:$0xff]  }
 0x627   : > { %2482 = vmatpush2.bf16.msra.mxu0 %v5888_v60  ;;  %v5975_v60 = vld [vmem:[%s7448_s7 + $0x240] ss:$8 sps:$4 sm:$0xff]  }
 0x628   : > { %2483 = vmatprep.subr.bf16.mxu0 %v5893_v61  ;;  %v6001_v61 = vld [vmem:[%s7448_s7 + $0x2a4] ss:$8 sps:$4 sm:$0xff]  }
 0x62b   : > { %2484 = vmatpush2.bf16.msra.mxu0 %v5891_v62  ;;  %v5999_v62 = vld [vmem:[%s7448_s7 + $0x2a0] ss:$8 sps:$4 sm:$0xff]  }
 0x62c   : > { %5035 = vmatprep.subr.msk.bf16.mxu0 %vm2154_vm4, %v6586_v29 }
 0x6ae   : > { %v2195_v2 = vpop.f32.mrf.mxu0 }
 0x6af   : > { %v2202_v7 = vpack.c.bf16 %v2195_v2, %v2195_v2  ;;  %v6010_v2 = vld [vmem:[%s7448_s7 + $0x354] ss:$8 sps:$4 sm:$0xff]  }
 0x6b0   : > { %v2197_v4 = vpop.f32.mrf.mxu0 }
 0x6b1   : > { %v2203_v5 = vpack.c.bf16 %v2197_v4, %v2197_v4  ;;  %v6008_v4 = vld [vmem:[%s7448_s7 + $0x350] ss:$8 sps:$4 sm:$0xff]  }
 0x6b2   : > { %v2199_v8 = vpop.f32.mrf.mxu0 }
 0x6b3   : > { %5033 = vmatprep.mubr.msk.bf16.mxu1 %vm2449_vm6, %v2203_v5  ;;  %v6013_v5 = vld [vmem:[%s7448_s7 + $0x344] ss:$8 sps:$4 sm:$0xff]   ;;  %v6014_v8 = vld [vmem:[%s7448_s7 + $0x330] ss:$8 sps:$4 sm:$0xff]  }
 0x6b4   : > { %v2200_v10 = vpop.f32.mrf.mxu0  ;;  %2670 = vmatmul.mubr.bf16.vlgmr.msra.gmra.mxu1 %v2202_v7  ;;  %v6016_v7 = vld [vmem:[%s7448_s7 + $0x334] ss:$8 sps:$4 sm:$0xff]  }
 0x6b5   : > { %2899 = vmatpush1.bf16.msra.mxu1 %v5936_v6  ;;  %v6011_v6 = vld [vmem:[%s7448_s7 + $0x340] ss:$8 sps:$4 sm:$0xff]  }
 0x6b6   : > { %v2271_v12 = vpop.f32.mrf.mxu0  ;;  %2900 = vmatprep.subr.bf16.mxu1 %v5941_v9  ;;  %v6019_v9 = vld [vmem:[%s7448_s7 + $0x324] ss:$8 sps:$4 sm:$0xff]   ;;  %v6017_v10 = vld [vmem:[%s7448_s7 + $0x320] ss:$8 sps:$4 sm:$0xff]  }
 0x6b7   : > { %v2278_v18 = vpack.c.bf16 %v2271_v12, %v2271_v12 }
 0x6b8   : > { %v2273_v14 = vpop.f32.mrf.mxu0 }
 0x6b9   : > { %v2279_v16 = vpack.c.bf16 %v2273_v14, %v2273_v14  ;;  %2901 = vmatpush1.bf16.msra.mxu1 %v5939_v11 }
 0x6ba   : > { %v2275_v47 = vpop.f32.mrf.mxu0  ;;  %2902 = vmatprep.subr.bf16.mxu1 %v5944_v13 }
 0x6bb   : > { %5004 = vmatprep.mubr.msk.bf16.mxu0 %vm2449_vm6, %v2279_v16 }
 0x6bc   : > { %v2276_v20 = vpop.f32.mrf.mxu0  ;;  %2486 = vmatmul.mubr.bf16.vlgmr.msra.gmra.mxu0 %v2278_v18 }
 0x6bd   : > { %2698 = vmatpush1.bf16.msra.mxu0 %v6589_v30  ;;  %2903 = vmatpush1.bf16.msra.mxu1 %v5942_v17 }
 0x6be   : > { %5095 = vmatprep.subr.msk.bf16.mxu0 %vm2154_vm4, %v6586_v29  ;;  %2904 = vmatprep.subr.bf16.mxu1 %v5947_v19 }
 0x6bf   : > { %2715 = vmatprep.mubr.bf16.mxu0 %v6207_v15 }
 0x6c1   : > { %2905 = vmatpush1.bf16.msra.mxu1 %v5945_v46 }
 0x6c2   : > { %2906 = vmatprep.subr.bf16.mxu1 %v5950_v21 }
 0x6c4   : > { %5036 = vmatmul.mubr.msk.bf16.vlgmr.msra.gmra.mxu0 %vm2150_vm5, %v5034_v23 }
 0x6c5   : > { %2907 = vmatpush1.bf16.msra.mxu1 %v5948_v22  ;;  %2961 = vmatpush1.bf16.msra.mxu0 %v6589_v30 }
 0x6c6   : > { %2908 = vmatprep.subr.bf16.mxu1 %v5953_v24  ;;  %2978 = vmatprep.mubr.bf16.mxu0 %v6207_v15 }
 0x6c7   : > { %3161 = vmatprep.subr.bf16.mxu0 %v5980_v25  ;;  %v6022_v25 = vld [vmem:[%s7448_s7 + $0x3f4] ss:$8 sps:$4 sm:$0xff]  }
 0x6c9   : > { %2909 = vmatpush1.bf16.msra.mxu1 %v5951_v26 }
 0x6ca   : > { %2910 = vmatprep.subr.bf16.mxu1 %v5956_v27 }
 0x6cc   : > { %5096 = vmatmul.mubr.msk.bf16.vlgmr.msra.gmra.mxu0 %vm2150_vm5, %v5094_v31 }
 0x6cd   : > { %2911 = vmatpush1.bf16.msra.mxu1 %v5954_v28  ;;  %3162 = vmatpush1.bf16.msra.mxu0 %v5978_v32 }
 0x6ce   : > { %2912 = vmatprep.subr.bf16.mxu1 %v5959_v33  ;;  %3163 = vmatprep.subr.bf16.mxu0 %v5983_v34  ;;  %v5154_v33 = vld [vmem:[%s7447_s6 + $0x10] sm:$0xf] }
 0x6cf   : > { %v6020_v34 = vld [vmem:[%s7448_s7 + $0x3f0] ss:$8 sps:$4 sm:$0xff]  }
 0x6d1   : > { %2913 = vmatpush1.bf16.msra.mxu1 %v5957_v35  ;;  %3164 = vmatpush1.bf16.msra.mxu0 %v5981_v36  ;;  %v6025_v35 = vld [vmem:[%s7448_s7 + $0x3e4] ss:$8 sps:$4 sm:$0xff]  }
 0x6d2   : > { %2918 = vmatprep.subr.bf16.mxu1 %v5962_v37  ;;  %3165 = vmatprep.subr.bf16.mxu0 %v5986_v38  ;;  %v6023_v37 = vld [vmem:[%s7448_s7 + $0x3e0] ss:$8 sps:$4 sm:$0xff]   ;;  %v6028_v38 = vld [vmem:[%s7448_s7 + $0x3d4] ss:$8 sps:$4 sm:$0xff]  }
 0x6d5   : > { %2919 = vmatpush2.bf16.msra.mxu1 %v5960_v39  ;;  %3166 = vmatpush1.bf16.msra.mxu0 %v5984_v40  ;;  %v6026_v39 = vld [vmem:[%s7448_s7 + $0x3d0] ss:$8 sps:$4 sm:$0xff]   ;;  %v6031_v40 = vld [vmem:[%s7448_s7 + $0x3c4] ss:$8 sps:$4 sm:$0xff]  }
 0x6d6   : > { %2920 = vmatprep.subr.bf16.mxu1 %v5965_v41  ;;  %3167 = vmatprep.subr.bf16.mxu0 %v5989_v42  ;;  %v6029_v41 = vld [vmem:[%s7448_s7 + $0x3c0] ss:$8 sps:$4 sm:$0xff]   ;;  %v6034_v42 = vld [vmem:[%s7448_s7 + $0x3b4] ss:$8 sps:$4 sm:$0xff]  }
 0x6d9   : > { %2921 = vmatpush2.bf16.msra.mxu1 %v5963_v43  ;;  %3168 = vmatpush1.bf16.msra.mxu0 %v5987_v44  ;;  %v6032_v43 = vld [vmem:[%s7448_s7 + $0x3b0] ss:$8 sps:$4 sm:$0xff]   ;;  %v6037_v44 = vld [vmem:[%s7448_s7 + $0x3a4] ss:$8 sps:$4 sm:$0xff]  }
 0x6da   : > { %2922 = vmatprep.subr.bf16.mxu1 %v5968_v45  ;;  %3169 = vmatprep.subr.bf16.mxu0 %v5992_v48  ;;  %v6035_v45 = vld [vmem:[%s7448_s7 + $0x3a0] ss:$8 sps:$4 sm:$0xff]   ;;  %v6040_v48 = vld [vmem:[%s7448_s7 + $0x394] ss:$8 sps:$4 sm:$0xff]  }
 0x6dd   : > { %2923 = vmatpush2.bf16.msra.mxu1 %v5966_v49  ;;  %3170 = vmatpush1.bf16.msra.mxu0 %v5990_v50  ;;  %v6038_v49 = vld [vmem:[%s7448_s7 + $0x390] ss:$8 sps:$4 sm:$0xff]   ;;  %v6043_v50 = vld [vmem:[%s7448_s7 + $0x384] ss:$8 sps:$4 sm:$0xff]  }
 0x6de   : > { %2924 = vmatprep.subr.bf16.mxu1 %v5971_v51  ;;  %3171 = vmatprep.subr.bf16.mxu0 %v5995_v52  ;;  %v6041_v51 = vld [vmem:[%s7448_s7 + $0x380] ss:$8 sps:$4 sm:$0xff]   ;;  %v6046_v52 = vld [vmem:[%s7448_s7 + $0x454] ss:$8 sps:$4 sm:$0xff]  }
 0x6e1   : > { %2925 = vmatpush2.bf16.msra.mxu1 %v5969_v53  ;;  %3172 = vmatpush1.bf16.msra.mxu0 %v5993_v54  ;;  %v6044_v53 = vld [vmem:[%s7448_s7 + $0x450] ss:$8 sps:$4 sm:$0xff]   ;;  %v6049_v54 = vld [vmem:[%s7448_s7 + $0x444] ss:$8 sps:$4 sm:$0xff]  }
 0x6e2   : > { %2926 = vmatprep.subr.bf16.mxu1 %v5974_v55  ;;  %3173 = vmatprep.subr.bf16.mxu0 %v5998_v56  ;;  %v6047_v55 = vld [vmem:[%s7448_s7 + $0x440] ss:$8 sps:$4 sm:$0xff]   ;;  %v6052_v56 = vld [vmem:[%s7448_s7 + $0x434] ss:$8 sps:$4 sm:$0xff]  }
 0x6e5   : > { %2927 = vmatpush2.bf16.msra.mxu1 %v5972_v57  ;;  %3174 = vmatpush1.bf16.msra.mxu0 %v5996_v58  ;;  %v6050_v57 = vld [vmem:[%s7448_s7 + $0x430] ss:$8 sps:$4 sm:$0xff]   ;;  %v6055_v58 = vld [vmem:[%s7448_s7 + $0x424] ss:$8 sps:$4 sm:$0xff]  }
 0x6e6   : > { %2928 = vmatprep.subr.bf16.mxu1 %v5977_v59  ;;  %3175 = vmatprep.subr.bf16.mxu0 %v6001_v61  ;;  %v6053_v59 = vld [vmem:[%s7448_s7 + $0x420] ss:$8 sps:$4 sm:$0xff]   ;;  %v6056_v61 = vld [vmem:[%s7448_s7 + $0x410] ss:$8 sps:$4 sm:$0xff]  }
 0x6e9   : > { %2929 = vmatpush2.bf16.msra.mxu1 %v5975_v60  ;;  %3176 = vmatpush1.bf16.msra.mxu0 %v5999_v62  ;;  %v6058_v60 = vld [vmem:[%s7448_s7 + $0x414] ss:$8 sps:$4 sm:$0xff]   ;;  %v6061_v62 = vld [vmem:[%s7448_s7 + $0x404] ss:$8 sps:$4 sm:$0xff]  }
 0x6ea   : > { %5155 = vmatprep.subr.msk.bf16.mxu1 %vm2154_vm4, %v6586_v29  ;;  %3181 = vmatprep.subr.bf16.mxu0 %v6004_v63  ;;  %v6007_v29 = vld [vmem:[%s7448_s7 + $0x364] ss:$8 sps:$4 sm:$0xff]   ;;  %v6059_v63 = vld [vmem:[%s7448_s7 + $0x400] ss:$8 sps:$4 sm:$0xff]  }
 0x6ed   : > { %3182 = vmatpush2.bf16.msra.mxu0 %v6002_v0  ;;  %v6063_v0 = vld [vmem:[%s7449_s8 + $0xa8] sm:$0xff]  }
 0x6ee   : > { %3183 = vmatprep.subr.bf16.mxu0 %v6007_v29  ;;  %v6065_v29 = vld [vmem:[%s7449_s8 + $0xa0] sm:$0xff]  }
 0x6f1   : > { %3184 = vmatpush2.bf16.msra.mxu0 %v6005_v1  ;;  %v6067_v1 = vld [vmem:[%s7449_s8 + $0x98] sm:$0xff]  }
 0x6f2   : > { %3185 = vmatprep.subr.bf16.mxu0 %v6010_v2  ;;  %v6069_v2 = vld [vmem:[%s7449_s8 + $0x90] sm:$0xff]  }
 0x6f5   : > { %3186 = vmatpush2.bf16.msra.mxu0 %v6008_v4  ;;  %v6071_v4 = vld [vmem:[%s7449_s8 + $0x88] sm:$0xff]  }
 0x6f6   : > { %3187 = vmatprep.subr.bf16.mxu0 %v6013_v5  ;;  %v6073_v5 = vld [vmem:[%s7449_s8 + $0x80] sm:$0xff]  }
 0x6f9   : > { %3188 = vmatpush2.bf16.msra.mxu0 %v6011_v6  ;;  %v6075_v6 = vld [vmem:[%s7449_s8 + $0x78] sm:$0xff]  }
 0x6fa   : > { %3189 = vmatprep.subr.bf16.mxu0 %v6016_v7  ;;  %v6077_v7 = vld [vmem:[%s7449_s8 + $0x70] sm:$0xff]  }
 0x6fd   : > { %3190 = vmatpush2.bf16.msra.mxu0 %v6014_v8  ;;  %v6079_v8 = vld [vmem:[%s7449_s8 + $0xd8] sm:$0xff]  }
 0x6fe   : > { %3191 = vmatprep.subr.bf16.mxu0 %v6019_v9  ;;  %v6081_v9 = vld [vmem:[%s7449_s8 + $0xd0] sm:$0xff]  }
 0x701   : > { %3192 = vmatpush2.bf16.msra.mxu0 %v6017_v10  ;;  %v6083_v10 = vld [vmem:[%s7449_s8 + $0xc8] sm:$0xff]  }
 0x702   : > { %3625 = vmatprep.subr.bf16.mxu0 %v6207_v15 }
 0x774   : > { %v2671_v11 = vpop.f32.mrf.mxu1 }
 0x776   : > { %v2673_v12 = vpop.f32.mrf.mxu1 }
 0x778   : > { %v2675_v13 = vpop.f32.mrf.mxu1 }
 0x77a   : > { %v2676_v14 = vpop.f32.mrf.mxu1 }
 0x77c   : > { %v2487_v16 = vpop.f32.mrf.mxu0 }
 0x77d   : > { %v6885_v17 = vadd.f32 %v2671_v11, %v2487_v16 }
 0x77e   : > { %v2489_v18 = vpop.f32.mrf.mxu0 }
 0x77f   : > { %v6887_v47 = vadd.f32 %v2673_v12, %v2489_v18 }
 0x780   : > { %v2491_v19 = vpop.f32.mrf.mxu0 }
 0x782   : > { %v2492_v20 = vpop.f32.mrf.mxu0 }
 0x784   : > { %v2717_v46 = vpop.f32.mrf.mxu0 }
 0x785   : > { %v2724_v23 = vpack.c.bf16 %v2717_v46, %v2717_v46 }
 0x786   : > { %v2719_v21 = vpop.f32.mrf.mxu0 }
 0x787   : > { %v2725_v22 = vpack.c.bf16 %v2719_v21, %v2719_v21 }
 0x788   : > { %v2721_v24 = vpop.f32.mrf.mxu0 }
 0x789   : > { %5093 = vmatprep.mubr.msk.bf16.mxu1 %vm2449_vm6, %v2725_v22 }
 0x78a   : > { %v2722_v26 = vpop.f32.mrf.mxu0  ;;  %2931 = vmatmul.mubr.bf16.vlgmr.msra.gmra.mxu1 %v2724_v23 }
 0x78b   : > { %3224 = vmatpush1.bf16.msra.mxu1 %v6589_v30  ;;  %3241 = vmatprep.mubr.bf16.mxu1 %v6207_v15 }
 0x78c   : > { %v2980_v27 = vpop.f32.mrf.mxu0  ;;  %3424 = vmatprep.subr.bf16.mxu1 %v6022_v25  ;;  %v6062_v25 = vld [vmem:[%s7449_s8 + $0x38] sm:$0xff]  }
 0x78d   : > { %v2987_v28 = vpack.c.bf16 %v2980_v27, %v2980_v27 }
 0x78e   : > { %v2982_v31 = vpop.f32.mrf.mxu0 }
 0x78f   : > { %v2988_v32 = vpack.c.bf16 %v2982_v31, %v2982_v31  ;;  %v6064_v31 = vld [vmem:[%s7449_s8 + $0x30] sm:$0xff]  }
 0x790   : > { %v2984_v30 = vpop.f32.mrf.mxu0 }
 0x791   : > { %5153 = vmatprep.mubr.msk.bf16.mxu0 %vm2449_vm6, %v2988_v32  ;;  %v6066_v32 = vld [vmem:[%s7449_s8 + $0x28] sm:$0xff]  }
 0x792   : > { %3194 = vmatmul.mubr.bf16.vlgmr.msra.gmra.mxu0 %v2987_v28  ;;  %5156 = vmatmul.mubr.msk.bf16.vlgmr.msra.gmra.mxu1 %vm2150_vm5, %v5154_v33  ;;  %v2985_v36 = vpop.f32.mrf.mxu0  ;;  %v6068_v33 = vld [vmem:[%s7449_s8 + $0x20] sm:$0xff]   ;;  %v6074_v30 = vld [vmem:[%s7449_s8 + $0x8] sm:$0xff]  }
 0x793   : > { %3425 = vmatpush1.bf16.msra.mxu1 %v6020_v34  ;;  %3626 = vmatpush1.bf16.msra.mxu0 %v6063_v0  ;;  %v6070_v34 = vld [vmem:[%s7449_s8 + $0x18] sm:$0xff]   ;;  %v6076_v36 = vld [vmem:[%s7449_s8] sm:$0xff]  }
 0x794   : > { %3426 = vmatprep.subr.bf16.mxu1 %v6025_v35  ;;  %3627 = vmatprep.subr.bf16.mxu0 %v6207_v15  ;;  %v6072_v35 = vld [vmem:[%s7449_s8 + $0x10] sm:$0xff]   ;;  %v6092_v0 = vld [vmem:[%s7449_s8 + $0x180] sm:$0xff]  }
 0x797   : > { %3427 = vmatpush1.bf16.msra.mxu1 %v6023_v37  ;;  %3628 = vmatpush1.bf16.msra.mxu0 %v6065_v29  ;;  %v6078_v37 = vld [vmem:[%s7449_s8 + $0x68] sm:$0xff]   ;;  %v6093_v29 = vld [vmem:[%s7449_s8 + $0x110] sm:$0xff]  }
 0x798   : > { %3428 = vmatprep.subr.bf16.mxu1 %v6028_v38  ;;  %3629 = vmatprep.subr.bf16.mxu0 %v6207_v15  ;;  %v6080_v38 = vld [vmem:[%s7449_s8 + $0x60] sm:$0xff]  }
 0x79b   : > { %3429 = vmatpush1.bf16.msra.mxu1 %v6026_v39  ;;  %3630 = vmatpush1.bf16.msra.mxu0 %v6067_v1  ;;  %v6082_v39 = vld [vmem:[%s7449_s8 + $0x58] sm:$0xff]  }
 0x79c   : > { %3430 = vmatprep.subr.bf16.mxu1 %v6031_v40  ;;  %3631 = vmatprep.subr.bf16.mxu0 %v6207_v15  ;;  %v6084_v40 = vld [vmem:[%s7449_s8 + $0x50] sm:$0xff]   ;;  %v6094_v1 = vld [vmem:[%s7449_s8 + $0x178] sm:$0xff]  }
 0x79f   : > { %3431 = vmatpush1.bf16.msra.mxu1 %v6029_v41  ;;  %3632 = vmatpush1.bf16.msra.mxu0 %v6069_v2  ;;  %v6085_v41 = vld [vmem:[%s7449_s8 + $0xc0] sm:$0xff]   ;;  %v6095_v2 = vld [vmem:[%s7449_s8 + $0x108] sm:$0xff]  }
 0x7a0   : > { %3432 = vmatprep.subr.bf16.mxu1 %v6034_v42  ;;  %3633 = vmatprep.subr.bf16.mxu0 %v6207_v15  ;;  %v6086_v42 = vld [vmem:[%s7449_s8 + $0x48] sm:$0xff]  }
 0x7a3   : > { %3433 = vmatpush1.bf16.msra.mxu1 %v6032_v43  ;;  %3634 = vmatpush1.bf16.msra.mxu0 %v6071_v4  ;;  %v6087_v43 = vld [vmem:[%s7449_s8 + $0xb8] sm:$0xff]   ;;  %v6096_v4 = vld [vmem:[%s7449_s8 + $0x170] sm:$0xff]  }
 0x7a4   : > { %3434 = vmatprep.subr.bf16.mxu1 %v6037_v44  ;;  %3635 = vmatprep.subr.bf16.mxu0 %v6207_v15  ;;  %v6088_v44 = vld [vmem:[%s7449_s8 + $0x40] sm:$0xff]  }
 0x7a7   : > { %3435 = vmatpush1.bf16.msra.mxu1 %v6035_v45  ;;  %3636 = vmatpush1.bf16.msra.mxu0 %v6073_v5  ;;  %v6089_v45 = vld [vmem:[%s7449_s8 + $0xb0] sm:$0xff]   ;;  %v6097_v5 = vld [vmem:[%s7449_s8 + $0x100] sm:$0xff]  }
 0x7a8   : > { %3436 = vmatprep.subr.bf16.mxu1 %v6040_v48  ;;  %3637 = vmatprep.subr.bf16.mxu0 %v6207_v15 }
 0x7ab   : > { %3437 = vmatpush1.bf16.msra.mxu1 %v6038_v49  ;;  %3638 = vmatpush1.bf16.msra.mxu0 %v6075_v6  ;;  %v6098_v6 = vld [vmem:[%s7449_s8 + $0x168] sm:$0xff]  }
 0x7ac   : > { %3438 = vmatprep.subr.bf16.mxu1 %v6043_v50  ;;  %3639 = vmatprep.subr.bf16.mxu0 %v6207_v15 }
 0x7af   : > { %3439 = vmatpush1.bf16.msra.mxu1 %v6041_v51  ;;  %3640 = vmatpush1.bf16.msra.mxu0 %v6077_v7  ;;  %v6099_v7 = vld [vmem:[%s7449_s8 + $0xf8] sm:$0xff]  }
 0x7b0   : > { %3444 = vmatprep.subr.bf16.mxu1 %v6046_v52  ;;  %3645 = vmatprep.subr.bf16.mxu0 %v6207_v15 }
 0x7b3   : > { %3445 = vmatpush2.bf16.msra.mxu1 %v6044_v53  ;;  %3646 = vmatpush2.bf16.msra.mxu0 %v6079_v8  ;;  %v6100_v8 = vld [vmem:[%s7449_s8 + $0x160] sm:$0xff]  }
 0x7b4   : > { %3446 = vmatprep.subr.bf16.mxu1 %v6049_v54  ;;  %3647 = vmatprep.subr.bf16.mxu0 %v6207_v15 }
 0x7b7   : > { %3447 = vmatpush2.bf16.msra.mxu1 %v6047_v55  ;;  %3648 = vmatpush2.bf16.msra.mxu0 %v6081_v9  ;;  %v6101_v9 = vld [vmem:[%s7449_s8 + $0xf0] sm:$0xff]  }
 0x7b8   : > { %3448 = vmatprep.subr.bf16.mxu1 %v6052_v56  ;;  %3649 = vmatprep.subr.bf16.mxu0 %v6207_v15 }
 0x7bb   : > { %3449 = vmatpush2.bf16.msra.mxu1 %v6050_v57  ;;  %3650 = vmatpush2.bf16.msra.mxu0 %v6083_v10  ;;  %v6102_v10 = vld [vmem:[%s7449_s8 + $0x158] sm:$0xff]  }
 0x7bc   : > { %3450 = vmatprep.subr.bf16.mxu1 %v6055_v58  ;;  %3651 = vmatprep.subr.bf16.mxu0 %v6207_v15  ;;  %v6090_v58 = vld [vmem:[%s7449_s8 + $0x188] sm:$0xff]  }
 0x7bf   : > { %3451 = vmatpush2.bf16.msra.mxu1 %v6053_v59  ;;  %3652 = vmatpush2.bf16.msra.mxu0 %v6085_v41  ;;  %v6129_v41 = vld [vmem:[%s7449_s8 + $0x1d0] sm:$0xff]  }
 0x7c0   : > { %3452 = vmatprep.subr.bf16.mxu1 %v6058_v60  ;;  %3653 = vmatprep.subr.bf16.mxu0 %v6207_v15  ;;  %v6091_v60 = vld [vmem:[%s7449_s8 + $0x118] sm:$0xff]  }
 0x7c3   : > { %3453 = vmatpush2.bf16.msra.mxu1 %v6056_v61  ;;  %3654 = vmatpush2.bf16.msra.mxu0 %v6087_v43  ;;  %v6131_v43 = vld [vmem:[%s7449_s8 + $0x1c8] sm:$0xff]  }
 0x7c4   : > { %3454 = vmatprep.subr.bf16.mxu1 %v6061_v62  ;;  %3655 = vmatprep.subr.bf16.mxu0 %v6207_v15 }
 0x7c7   : > { %3455 = vmatpush2.bf16.msra.mxu1 %v6059_v63  ;;  %3656 = vmatpush2.bf16.msra.mxu0 %v6089_v45  ;;  %v6133_v45 = vld [vmem:[%s7449_s8 + $0x1c0] sm:$0xff]  }
 0x7c8   : > { %3751 = vmatprep.subr.bf16.mxu1 %v6207_v15  ;;  %3912 = vmatprep.subr.bf16.mxu0 %v6207_v15 }
 0x84a   : > { %v2932_v11 = vpop.f32.mrf.mxu1 }
 0x84b   : > { %v2939_v12 = vadd.f32 %v2932_v11, %v6885_v17  ;;  %v6103_v11 = vld [vmem:[%s7449_s8 + $0xe8] sm:$0xff]  }
 0x84c   : > { %v2934_v13 = vpop.f32.mrf.mxu1 }
 0x84d   : > { %v2940_v14 = vadd.f32 %v2934_v13, %v6887_v47  ;;  %v6105_v13 = vld [vmem:[%s7449_s8 + $0xe0] sm:$0xff]  }
 0x84e   : > { %v2936_v16 = vpop.f32.mrf.mxu1 }
 0x84f   : > { %v6107_v16 = vld [vmem:[%s7449_s8 + $0x148] sm:$0xff]  }
 0x850   : > { %v2937_v18 = vpop.f32.mrf.mxu1 }
 0x851   : > { %v6108_v18 = vld [vmem:[%s7449_s8 + $0x1b0] sm:$0xff]  }
 0x852   : > { %v3195_v19 = vpop.f32.mrf.mxu0  ;;  %v3243_v20 = vpop.f32.mrf.mxu1 }
 0x853   : > { %v7028_v46 = vadd.f32 %v3195_v19, %v2939_v12  ;;  %v3250_v26 = vpack.c.bf16 %v3243_v20, %v3243_v20  ;;  %v6104_v12 = vld [vmem:[%s7449_s8 + $0x150] sm:$0xff]   ;;  %v6109_v19 = vld [vmem:[%s7449_s8 + $0x140] sm:$0xff]   ;;  %v6110_v20 = vld [vmem:[%s7449_s8 + $0x1a8] sm:$0xff]  }
 0x854   : > { %v3197_v21 = vpop.f32.mrf.mxu0  ;;  %v3245_v22 = vpop.f32.mrf.mxu1 }
 0x855   : > { %v7030_v23 = vadd.f32 %v3197_v21, %v2940_v14  ;;  %v3251_v24 = vpack.c.bf16 %v3245_v22, %v3245_v22  ;;  %v6106_v14 = vld [vmem:[%s7449_s8 + $0x1b8] sm:$0xff]   ;;  %v6112_v21 = vld [vmem:[%s7449_s8 + $0x1a0] sm:$0xff]   ;;  %v6113_v22 = vld [vmem:[%s7449_s8 + $0x130] sm:$0xff]  }
 0x856   : > { %v3247_v17 = vpop.f32.mrf.mxu1  ;;  %v3199_v27 = vpop.f32.mrf.mxu0 }
 0x857   : > { %5213 = vmatprep.mubr.msk.bf16.mxu1 %vm2449_vm6, %v3251_v24  ;;  %v6115_v24 = vld [vmem:[%s7449_s8 + $0x128] sm:$0xff]  }
 0x858   : > { %v3248_v47 = vpop.f32.mrf.mxu1  ;;  %3457 = vmatmul.mubr.bf16.vlgmr.msra.gmra.mxu1 %v3250_v26  ;;  %v3200_v28 = vpop.f32.mrf.mxu0  ;;  %v6117_v26 = vld [vmem:[%s7449_s8 + $0x120] sm:$0xff]   ;;  %v6118_v17 = vld [vmem:[%s7449_s8 + $0x268] sm:$0xff]  }
 0x859   : > { %3752 = vmatpush1.bf16.msra.mxu1 %v6062_v25  ;;  %v6116_v25 = vld [vmem:[%s7449_s8 + $0x190] sm:$0xff]   ;;  %v6119_v28 = vld [vmem:[%s7449_s8 + $0x1f8] sm:$0xff]  }
 0x85a   : > { %3753 = vmatprep.subr.bf16.mxu1 %v6207_v15 }
 0x85d   : > { %3754 = vmatpush1.bf16.msra.mxu1 %v6064_v31 }
 0x85e   : > { %3755 = vmatprep.subr.bf16.mxu1 %v6207_v15 }
 0x861   : > { %3756 = vmatpush1.bf16.msra.mxu1 %v6066_v32 }
 0x862   : > { %3757 = vmatprep.subr.bf16.mxu1 %v6207_v15 }
 0x865   : > { %3758 = vmatpush1.bf16.msra.mxu1 %v6068_v33  ;;  %v6120_v33 = vld [vmem:[%s7449_s8 + $0x260] sm:$0xff]  }
 0x866   : > { %3759 = vmatprep.subr.bf16.mxu1 %v6207_v15 }
 0x869   : > { %3760 = vmatpush1.bf16.msra.mxu1 %v6070_v34  ;;  %v6121_v34 = vld [vmem:[%s7449_s8 + $0x1f0] sm:$0xff]  }
 0x86a   : > { %3761 = vmatprep.subr.bf16.mxu1 %v6207_v15 }
 0x86d   : > { %3762 = vmatpush1.bf16.msra.mxu1 %v6072_v35  ;;  %v6122_v35 = vld [vmem:[%s7449_s8 + $0x258] sm:$0xff]  }
 0x86e   : > { %3763 = vmatprep.subr.bf16.mxu1 %v6207_v15 }
 0x871   : > { %3764 = vmatpush1.bf16.msra.mxu1 %v6074_v30  ;;  %v6123_v30 = vld [vmem:[%s7449_s8 + $0x1e8] sm:$0xff]  }
 0x872   : > { %3765 = vmatprep.subr.bf16.mxu1 %v6207_v15 }
 0x875   : > { %3766 = vmatpush1.bf16.msra.mxu1 %v6076_v36  ;;  %v6124_v36 = vld [vmem:[%s7449_s8 + $0x250] sm:$0xff]  }
 0x876   : > { %3771 = vmatprep.subr.bf16.mxu1 %v6207_v15 }
 0x879   : > { %3772 = vmatpush2.bf16.msra.mxu1 %v6078_v37  ;;  %v6125_v37 = vld [vmem:[%s7449_s8 + $0x1e0] sm:$0xff]  }
 0x87a   : > { %3773 = vmatprep.subr.bf16.mxu1 %v6207_v15 }
 0x87d   : > { %3774 = vmatpush2.bf16.msra.mxu1 %v6080_v38  ;;  %v6126_v38 = vld [vmem:[%s7449_s8 + $0x248] sm:$0xff]  }
 0x87e   : > { %3775 = vmatprep.subr.bf16.mxu1 %v6207_v15 }
 0x881   : > { %3776 = vmatpush2.bf16.msra.mxu1 %v6082_v39  ;;  %v6127_v39 = vld [vmem:[%s7449_s8 + $0x1d8] sm:$0xff]  }
 0x882   : > { %3777 = vmatprep.subr.bf16.mxu1 %v6207_v15 }
 0x885   : > { %3778 = vmatpush2.bf16.msra.mxu1 %v6084_v40  ;;  %v6128_v40 = vld [vmem:[%s7449_s8 + $0x240] sm:$0xff]  }
 0x886   : > { %3779 = vmatprep.subr.bf16.mxu1 %v6207_v15 }
 0x889   : > { %3780 = vmatpush2.bf16.msra.mxu1 %v6086_v42  ;;  %v6130_v42 = vld [vmem:[%s7449_s8 + $0x238] sm:$0xff]  }
 0x88a   : > { %3781 = vmatprep.subr.bf16.mxu1 %v6207_v15 }
 0x88d   : > { %3782 = vmatpush2.bf16.msra.mxu1 %v6088_v44  ;;  %v6132_v44 = vld [vmem:[%s7449_s8 + $0x230] sm:$0xff]  }
 0x88e   : > { %4072 = vmatprep.subr.bf16.mxu1 %v6207_v15 }
 0x918   : > { %v3458_v48 = vpop.f32.mrf.mxu1 }
 0x919   : > { %v3465_v49 = vadd.f32 %v3458_v48, %v7028_v46  ;;  %v6111_v46 = vld [vmem:[%s7449_s8 + $0x138] sm:$0xff]  }
 0x91a   : > { %v3460_v50 = vpop.f32.mrf.mxu1  ;;  %v6134_v48 = vld [vmem:[%s7449_s8 + $0x298] sm:$0xff]  }
 0x91b   : > { %3467 = vst [vmem:[%s439_s29] sm:$0x7f] %v3465_v49  ;;  %v3470_v51 = vmax.f32 %v3465_v49, 0.0  ;;  %v3466_v52 = vadd.f32 %v3460_v50, %v7030_v23  ;;  %v6114_v23 = vld [vmem:[%s7449_s8 + $0x198] sm:$0xff]   ;;  %v6135_v49 = vld [vmem:[%s7449_s8 + $0x228] sm:$0xff]   ;;  %v6136_v50 = vld [vmem:[%s7449_s8 + $0x290] sm:$0xff]  }
 0x91c   : > { %v3462_v53 = vpop.f32.mrf.mxu1 }
 0x91d   : > { %3469 = vst.msk [vmem:[%s439_s29 + $0x8] sm:$0x7f] %vm3468_vm7, %v3466_v52  ;;  %v3471_v54 = vmax.f32 %v3466_v52, 0.0  ;;  %v7107_v55 = vpack.c.bf16 %v3470_v51, %v3470_v51  ;;  %v6137_v51 = vld [vmem:[%s7449_s8 + $0x220] sm:$0xff]   ;;  %v6138_v52 = vld [vmem:[%s7449_s8 + $0x288] sm:$0xff]   ;;  %v6139_v53 = vld [vmem:[%s7449_s8 + $0x218] sm:$0xff]  }
 0x91e   : > { %v3463_v56 = vpop.f32.mrf.mxu1 }
 0x91f   : > { %v7109_v57 = vpack.c.bf16 %v3471_v54, %v3471_v54  ;;  %v7124_v61 = vshrl.u32 %v7107_v55, 16  ;;  %v3822_v31 = vrot.slane %v7107_v55, 1  ;;  %v6140_v54 = vld [vmem:[%s7449_s8 + $0x280] sm:$0xff]   ;;  %v6141_v56 = vld [vmem:[%s7449_s8 + $0x210] sm:$0xff]  }
 0x921   : > { %5271 = vmatprep.mubr.msk.bf16.mxu1 %vm2449_vm6, %v7109_v57  ;;  %v7117_v59 = vshrl.u32 %v7109_v57, 16  ;;  %v3823_v62 = vrot.slane %v7109_v57, 1  ;;  %v3982_v27 = vrot.slane %v7124_v61, 1  ;;  %v4143_v32 = vrot.slane %v7109_v57, 2 }
 0x922   : > { %3784 = vmatmul.mubr.bf16.vlgmr.msra.gmra.mxu1 %v7107_v55 }
 0x923   : > { %4073 = vmatpush1.bf16.msra.mxu1 %v6090_v58  ;;  %5256 = vmatprep.mubr.msk.bf16.mxu0 %vm2449_vm6, %v7117_v59  ;;  %v3983_v63 = vrot.slane %v7117_v59, 1  ;;  %v4303_v47 = vrot.slane %v7117_v59, 2  ;;  %v6142_v58 = vld [vmem:[%s7449_s8 + $0x278] sm:$0xff]   ;;  %v6143_v59 = vld [vmem:[%s7449_s8 + $0x208] sm:$0xff]  }
 0x924   : > { %3658 = vmatmul.mubr.bf16.vlgmr.msra.gmra.mxu0 %v7124_v61  ;;  %4074 = vmatprep.subr.bf16.mxu1 %v6207_v15 }
 0x925   : > { %3913 = vmatpush1.bf16.msra.mxu0 %v6091_v60  ;;  %5314 = vmatprep.mubr.msk.bf16.mxu0 %vm2449_vm6, %v3823_v62  ;;  %v6144_v60 = vld [vmem:[%s7449_s8 + $0x270] sm:$0xff]   ;;  %v6145_v62 = vld [vmem:[%s7449_s8 + $0x200] sm:$0xff]  }
 0x926   : > { %5357 = vmatprep.mubr.msk.bf16.mxu1 %vm2449_vm6, %v3983_v63  ;;  %3914 = vmatprep.subr.bf16.mxu0 %v6207_v15  ;;  %v4302_v63 = vrot.slane %v7124_v61, 2  ;;  %v6147_v61 = vld [vmem:[%s7449_s8 + $0x2d0] sm:$0xff]  }
 0x927   : > { %4075 = vmatpush1.bf16.msra.mxu1 %v6092_v0  ;;  %v6146_v0 = vld [vmem:[%s7449_s8 + $0x2d8] sm:$0xff]  }
 0x928   : > { %4076 = vmatprep.subr.bf16.mxu1 %v6207_v15 }
 0x929   : > { %3915 = vmatpush1.bf16.msra.mxu0 %v6093_v29  ;;  %v4142_v29 = vrot.slane %v7107_v55, 2 }
 0x92a   : > { %3916 = vmatprep.subr.bf16.mxu0 %v6207_v15 }
 0x92b   : > { %4077 = vmatpush1.bf16.msra.mxu1 %v6094_v1  ;;  %v4463_v1 = vrot.slane %v7109_v57, 3  ;;  %v6149_v57 = vld [vmem:[%s7449_s8 + $0x2c0] sm:$0xff]  }
 0x92c   : > { %4078 = vmatprep.subr.bf16.mxu1 %v6207_v15 }
 0x92d   : > { %3917 = vmatpush1.bf16.msra.mxu0 %v6095_v2  ;;  %v6148_v2 = vld [vmem:[%s7449_s8 + $0x2c8] sm:$0xff]  }
 0x92e   : > { %3918 = vmatprep.subr.bf16.mxu0 %v6207_v15 }
 0x92f   : > { %4079 = vmatpush1.bf16.msra.mxu1 %v6096_v4  ;;  %v6150_v4 = vld [vmem:[%s7449_s8 + $0x2b8] sm:$0xff]  }
 0x930   : > { %4080 = vmatprep.subr.bf16.mxu1 %v6207_v15 }
 0x931   : > { %3919 = vmatpush1.bf16.msra.mxu0 %v6097_v5  ;;  %v6151_v5 = vld [vmem:[%s7449_s8 + $0x2b0] sm:$0xff]  }
 0x932   : > { %3920 = vmatprep.subr.bf16.mxu0 %v6207_v15 }
 0x933   : > { %4081 = vmatpush1.bf16.msra.mxu1 %v6098_v6  ;;  %v6152_v6 = vld [vmem:[%s7449_s8 + $0x2a8] sm:$0xff]  }
 0x934   : > { %4082 = vmatprep.subr.bf16.mxu1 %v6207_v15 }
 0x935   : > { %3921 = vmatpush1.bf16.msra.mxu0 %v6099_v7  ;;  %v6153_v7 = vld [vmem:[%s7449_s8 + $0x2a0] sm:$0xff]  }
 0x936   : > { %3922 = vmatprep.subr.bf16.mxu0 %v6207_v15 }
 0x937   : > { %4083 = vmatpush1.bf16.msra.mxu1 %v6100_v8  ;;  %v6154_v8 = vld [vmem:[%s7449_s8 + $0x308] sm:$0xff]  }
 0x938   : > { %4084 = vmatprep.subr.bf16.mxu1 %v6207_v15 }
 0x939   : > { %3923 = vmatpush1.bf16.msra.mxu0 %v6101_v9  ;;  %v6155_v9 = vld [vmem:[%s7449_s8 + $0x300] sm:$0xff]  }
 0x93a   : > { %3924 = vmatprep.subr.bf16.mxu0 %v6207_v15 }
 0x93b   : > { %4085 = vmatpush1.bf16.msra.mxu1 %v6102_v10  ;;  %v6156_v10 = vld [vmem:[%s7449_s8 + $0x2f8] sm:$0xff]  }
 0x93c   : > { %4086 = vmatprep.subr.bf16.mxu1 %v6207_v15 }
 0x93d   : > { %3925 = vmatpush1.bf16.msra.mxu0 %v6103_v11  ;;  %v6157_v11 = vld [vmem:[%s7449_s8 + $0x2f0] sm:$0xff]  }
 0x93e   : > { %3926 = vmatprep.subr.bf16.mxu0 %v6207_v15 }
 0x93f   : > { %4087 = vmatpush1.bf16.msra.mxu1 %v6104_v12  ;;  %v6158_v12 = vld [vmem:[%s7449_s8 + $0x2e8] sm:$0xff]  }
 0x940   : > { %4092 = vmatprep.subr.bf16.mxu1 %v6207_v15 }
 0x941   : > { %3927 = vmatpush1.bf16.msra.mxu0 %v6105_v13  ;;  %v6159_v13 = vld [vmem:[%s7449_s8 + $0x2e0] sm:$0xff]  }
 0x942   : > { %3932 = vmatprep.subr.bf16.mxu0 %v6207_v15 }
 0x943   : > { %4093 = vmatpush2.bf16.msra.mxu1 %v6106_v14  ;;  %v4462_v14 = vrot.slane %v7107_v55, 3 }
 0x944   : > { %4094 = vmatprep.subr.bf16.mxu1 %v6207_v15 }
 0x945   : > { %3933 = vmatpush2.bf16.msra.mxu0 %v6107_v16  ;;  %v6160_v16 = vld [vmem:[%s7450_s9 + $0x18] sm:$0xff]  }
 0x946   : > { %3934 = vmatprep.subr.bf16.mxu0 %v6207_v15 }
 0x947   : > { %4095 = vmatpush2.bf16.msra.mxu1 %v6108_v18  ;;  %v6161_v18 = vld [vmem:[%s7450_s9 + $0x10] sm:$0xff]  }
 0x948   : > { %4096 = vmatprep.subr.bf16.mxu1 %v6207_v15 }
 0x949   : > { %3935 = vmatpush2.bf16.msra.mxu0 %v6109_v19 }
 0x94a   : > { %3936 = vmatprep.subr.bf16.mxu0 %v6207_v15 }
 0x94b   : > { %4097 = vmatpush2.bf16.msra.mxu1 %v6110_v20 }
 0x94c   : > { %4098 = vmatprep.subr.bf16.mxu1 %v6207_v15 }
 0x94d   : > { %3937 = vmatpush2.bf16.msra.mxu0 %v6111_v46 }
 0x94e   : > { %3938 = vmatprep.subr.bf16.mxu0 %v6207_v15 }
 0x94f   : > { %4099 = vmatpush2.bf16.msra.mxu1 %v6112_v21 }
 0x950   : > { %4100 = vmatprep.subr.bf16.mxu1 %v6207_v15 }
 0x951   : > { %3939 = vmatpush2.bf16.msra.mxu0 %v6113_v22 }
 0x952   : > { %3940 = vmatprep.subr.bf16.mxu0 %v6207_v15 }
 0x953   : > { %4101 = vmatpush2.bf16.msra.mxu1 %v6114_v23 }
 0x954   : > { %4102 = vmatprep.subr.bf16.mxu1 %v6207_v15 }
 0x955   : > { %3941 = vmatpush2.bf16.msra.mxu0 %v6115_v24 }
 0x956   : > { %3942 = vmatprep.subr.bf16.mxu0 %v6207_v15 }
 0x957   : > { %4103 = vmatpush2.bf16.msra.mxu1 %v6116_v25  ;;  %v6162_v25 = vld [vmem:[%s7450_s9 + $0x8] sm:$0xff]  }
 0x958   : > { %4392 = vmatprep.subr.bf16.mxu1 %v6207_v15 }
 0x959   : > { %3943 = vmatpush2.bf16.msra.mxu0 %v6117_v26  ;;  %v6163_v26 = vld [vmem:[%s7450_s9] sm:$0xff]  }
 0x95a   : > { %4105 = vmatmul.mubr.bf16.vlgmr.msra.gmra.mxu1 %v3982_v27  ;;  %4232 = vmatprep.subr.bf16.mxu0 %v6207_v15 }
 0x95b   : > { %4393 = vmatpush1.bf16.msra.mxu1 %v6118_v17  ;;  %5443 = vmatprep.mubr.msk.bf16.mxu1 %vm2449_vm6, %v4303_v47 }
 0x95c   : > { %3945 = vmatmul.mubr.bf16.vlgmr.msra.gmra.mxu0 %v3822_v31  ;;  %4394 = vmatprep.subr.bf16.mxu1 %v6207_v15 }
 0x95d   : > { %4233 = vmatpush1.bf16.msra.mxu0 %v6119_v28  ;;  %5400 = vmatprep.mubr.msk.bf16.mxu0 %vm2449_vm6, %v4143_v32 }
 0x95e   : > { %4234 = vmatprep.subr.bf16.mxu0 %v6207_v15 }
 0x95f   : > { %4395 = vmatpush1.bf16.msra.mxu1 %v6120_v33 }
 0x960   : > { %4396 = vmatprep.subr.bf16.mxu1 %v6207_v15 }
 0x961   : > { %4235 = vmatpush1.bf16.msra.mxu0 %v6121_v34 }
 0x962   : > { %4236 = vmatprep.subr.bf16.mxu0 %v6207_v15 }
 0x963   : > { %4397 = vmatpush1.bf16.msra.mxu1 %v6122_v35 }
 0x964   : > { %4398 = vmatprep.subr.bf16.mxu1 %v6207_v15 }
 0x965   : > { %4237 = vmatpush1.bf16.msra.mxu0 %v6123_v30 }
 0x966   : > { %4238 = vmatprep.subr.bf16.mxu0 %v6207_v15 }
 0x967   : > { %4399 = vmatpush1.bf16.msra.mxu1 %v6124_v36 }
 0x968   : > { %4400 = vmatprep.subr.bf16.mxu1 %v6207_v15 }
 0x969   : > { %4239 = vmatpush1.bf16.msra.mxu0 %v6125_v37 }
 0x96a   : > { %4240 = vmatprep.subr.bf16.mxu0 %v6207_v15 }
 0x96b   : > { %4401 = vmatpush1.bf16.msra.mxu1 %v6126_v38 }
 0x96c   : > { %4402 = vmatprep.subr.bf16.mxu1 %v6207_v15 }
 0x96d   : > { %4241 = vmatpush1.bf16.msra.mxu0 %v6127_v39 }
 0x96e   : > { %4242 = vmatprep.subr.bf16.mxu0 %v6207_v15 }
 0x96f   : > { %4403 = vmatpush1.bf16.msra.mxu1 %v6128_v40 }
 0x970   : > { %4404 = vmatprep.subr.bf16.mxu1 %v6207_v15 }
 0x971   : > { %4243 = vmatpush1.bf16.msra.mxu0 %v6129_v41 }
 0x972   : > { %4244 = vmatprep.subr.bf16.mxu0 %v6207_v15 }
 0x973   : > { %4405 = vmatpush1.bf16.msra.mxu1 %v6130_v42 }
 0x974   : > { %4406 = vmatprep.subr.bf16.mxu1 %v6207_v15 }
 0x975   : > { %4245 = vmatpush1.bf16.msra.mxu0 %v6131_v43 }
 0x976   : > { %4246 = vmatprep.subr.bf16.mxu0 %v6207_v15 }
 0x977   : > { %4407 = vmatpush1.bf16.msra.mxu1 %v6132_v44 }
 0x978   : > { %4412 = vmatprep.subr.bf16.mxu1 %v6207_v15 }
 0x979   : > { %4247 = vmatpush1.bf16.msra.mxu0 %v6133_v45 }
 0x97a   : > { %4252 = vmatprep.subr.bf16.mxu0 %v6207_v15 }
 0x97b   : > { %4413 = vmatpush2.bf16.msra.mxu1 %v6134_v48 }
 0x97c   : > { %4414 = vmatprep.subr.bf16.mxu1 %v6207_v15 }
 0x97d   : > { %4253 = vmatpush2.bf16.msra.mxu0 %v6135_v49 }
 0x97e   : > { %4254 = vmatprep.subr.bf16.mxu0 %v6207_v15 }
 0x97f   : > { %4415 = vmatpush2.bf16.msra.mxu1 %v6136_v50 }
 0x980   : > { %4416 = vmatprep.subr.bf16.mxu1 %v6207_v15 }
 0x981   : > { %4255 = vmatpush2.bf16.msra.mxu0 %v6137_v51 }
 0x982   : > { %4256 = vmatprep.subr.bf16.mxu0 %v6207_v15 }
 0x983   : > { %4417 = vmatpush2.bf16.msra.mxu1 %v6138_v52 }
 0x984   : > { %4418 = vmatprep.subr.bf16.mxu1 %v6207_v15 }
 0x985   : > { %4257 = vmatpush2.bf16.msra.mxu0 %v6139_v53 }
 0x986   : > { %4258 = vmatprep.subr.bf16.mxu0 %v6207_v15 }
 0x987   : > { %4419 = vmatpush2.bf16.msra.mxu1 %v6140_v54  ;;  %v4603_v54 = vld [vmem:[#allocation2] sm:$0x1] }
 0x988   : > { %4420 = vmatprep.subr.bf16.mxu1 %v6207_v15 }
 0x989   : > { %4259 = vmatpush2.bf16.msra.mxu0 %v6141_v56 }
 0x98a   : > { %4260 = vmatprep.subr.bf16.mxu0 %v6207_v15 }
 0x98b   : > { %4421 = vmatpush2.bf16.msra.mxu1 %v6142_v58 }
 0x98c   : > { %4422 = vmatprep.subr.bf16.mxu1 %v6207_v15 }
 0x98d   : > { %4261 = vmatpush2.bf16.msra.mxu0 %v6143_v59 }
 0x98e   : > { %4262 = vmatprep.subr.bf16.mxu0 %v6207_v15 }
 0x98f   : > { %4423 = vmatpush2.bf16.msra.mxu1 %v6144_v60 }
 0x990   : > { %5676 = vmatprep.subr.bf16.mxu1 %v6205_v3 }
 0x991   : > { %4263 = vmatpush2.bf16.msra.mxu0 %v6145_v62 }
 0x992   : > { %4425 = vmatmul.mubr.bf16.vlgmr.msra.gmra.mxu1 %v4302_v63  ;;  %4552 = vmatprep.subr.bf16.mxu0 %v6207_v15 }
 0x993   : > { %5684 = vmatprep.mubr.msk.bf16.mxu1 %vm6206_vm2, %v6205_v3  ;;  %5677 = vmatpush3.bf16.msra.mxu1 %v6160_v16 }
 0x994   : > { %4265 = vmatmul.mubr.bf16.vlgmr.msra.gmra.mxu0 %v4142_v29  ;;  %5678 = vmatprep.subr.bf16.mxu1 %v6205_v3 }
 0x995   : > { %4553 = vmatpush1.bf16.msra.mxu0 %v6146_v0  ;;  %5486 = vmatprep.mubr.msk.bf16.mxu0 %vm2449_vm6, %v4463_v1 }
 0x996   : > { %4554 = vmatprep.subr.bf16.mxu0 %v6207_v15 }
 0x997   : > { %5679 = vmatpush3.bf16.msra.mxu1 %v6161_v18 }
 0x998   : > { %5680 = vmatprep.subr.bf16.mxu1 %v6205_v3 }
 0x999   : > { %4555 = vmatpush1.bf16.msra.mxu0 %v6147_v61 }
 0x99a   : > { %4556 = vmatprep.subr.bf16.mxu0 %v6207_v15 }
 0x99b   : > { %5681 = vmatpush3.bf16.msra.mxu1 %v6162_v25 }
 0x99c   : > { %5682 = vmatprep.subr.bf16.mxu1 %v6205_v3 }
 0x99d   : > { %4557 = vmatpush1.bf16.msra.mxu0 %v6148_v2 }
 0x99e   : > { %4558 = vmatprep.subr.bf16.mxu0 %v6207_v15 }
 0x99f   : > { %5683 = vmatpush3.bf16.msra.mxu1 %v6163_v26 }
 0x9a1   : > { %4559 = vmatpush1.bf16.msra.mxu0 %v6149_v57 }
 0x9a2   : > { %4560 = vmatprep.subr.bf16.mxu0 %v6207_v15 }
 0x9a5   : > { %4561 = vmatpush1.bf16.msra.mxu0 %v6150_v4 }
 0x9a6   : > { %4562 = vmatprep.subr.bf16.mxu0 %v6207_v15 }
 0x9a9   : > { %4563 = vmatpush1.bf16.msra.mxu0 %v6151_v5 }
 0x9aa   : > { %4564 = vmatprep.subr.bf16.mxu0 %v6207_v15 }
 0x9ad   : > { %4565 = vmatpush1.bf16.msra.mxu0 %v6152_v6 }
 0x9ae   : > { %4566 = vmatprep.subr.bf16.mxu0 %v6207_v15 }
 0x9b1   : > { %4567 = vmatpush1.bf16.msra.mxu0 %v6153_v7 }
 0x9b2   : > { %4572 = vmatprep.subr.bf16.mxu0 %v6207_v15 }
 0x9b5   : > { %4573 = vmatpush2.bf16.msra.mxu0 %v6154_v8 }
 0x9b6   : > { %4574 = vmatprep.subr.bf16.mxu0 %v6207_v15 }
 0x9b9   : > { %4575 = vmatpush2.bf16.msra.mxu0 %v6155_v9 }
 0x9ba   : > { %4576 = vmatprep.subr.bf16.mxu0 %v6207_v15 }
 0x9bd   : > { %4577 = vmatpush2.bf16.msra.mxu0 %v6156_v10 }
 0x9be   : > { %4578 = vmatprep.subr.bf16.mxu0 %v6207_v15 }
 0x9c1   : > { %4579 = vmatpush2.bf16.msra.mxu0 %v6157_v11 }
 0x9c2   : > { %4580 = vmatprep.subr.bf16.mxu0 %v6207_v15 }
 0x9c5   : > { %4581 = vmatpush2.bf16.msra.mxu0 %v6158_v12 }
 0x9c6   : > { %4582 = vmatprep.subr.bf16.mxu0 %v6207_v15 }
 0x9c9   : > { %4583 = vmatpush2.bf16.msra.mxu0 %v6159_v13 }
 0x9cc   : > { %4585 = vmatmul.mubr.bf16.vlgmr.msra.gmra.mxu0 %v4462_v14 }
 0x9e2   : > { %v3785_v19 = vpop.f32.mrf.mxu1 }
 0x9e4   : > { %v3659_v15 = vpop.f32.mrf.mxu0  ;;  %v3787_v20 = vpop.f32.mrf.mxu1 }
 0x9e5   : > { %v3786_v46 = vadd.f32 %v3785_v19, %v3659_v15 }
 0x9e6   : > { %v3661_v55 = vpop.f32.mrf.mxu0  ;;  %v3788_v21 = vpop.f32.mrf.mxu1 }
 0x9e8   : > { %v3662_v22 = vpop.f32.mrf.mxu0  ;;  %v3789_v23 = vpop.f32.mrf.mxu1 }
 0x9ea   : > { %v3663_v24 = vpop.f32.mrf.mxu0 }
 0xa1a   : > { %v4106_v17 = vpop.f32.mrf.mxu1 }
 0xa1c   : > { %v3946_v27 = vpop.f32.mrf.mxu0  ;;  %v4108_v47 = vpop.f32.mrf.mxu1 }
 0xa1d   : > { %v3952_v28 = vadd.f32 %v3946_v27, %v3786_v46 }
 0xa1e   : > { %v3948_v31 = vpop.f32.mrf.mxu0  ;;  %v4109_v32 = vpop.f32.mrf.mxu1 }
 0xa1f   : > { %v4112_v33 = vadd.f32 %v4106_v17, %v3952_v28 }
 0xa20   : > { %v3949_v34 = vpop.f32.mrf.mxu0  ;;  %v4110_v35 = vpop.f32.mrf.mxu1 }
 0xa22   : > { %v3950_v30 = vpop.f32.mrf.mxu0 }
 0xa52   : > { %v4426_v36 = vpop.f32.mrf.mxu1 }
 0xa54   : > { %v4266_v37 = vpop.f32.mrf.mxu0  ;;  %v4428_v38 = vpop.f32.mrf.mxu1 }
 0xa55   : > { %v4272_v43 = vadd.f32 %v4266_v37, %v4112_v33 }
 0xa56   : > { %v4268_v39 = vpop.f32.mrf.mxu0  ;;  %v4429_v3 = vpop.f32.mrf.mxu1 }
 0xa57   : > { %v4432_v44 = vadd.f32 %v4426_v36, %v4272_v43 }
 0xa58   : > { %v4269_v40 = vpop.f32.mrf.mxu0  ;;  %v4430_v41 = vpop.f32.mrf.mxu1 }
 0xa5a   : > { %v4270_v42 = vpop.f32.mrf.mxu0 }
 0xa8c   : > { %v4586_v45 = vpop.f32.mrf.mxu0 }
 0xa8d   : > { %v4592_v48 = vadd.f32 %v4586_v45, %v4432_v44 }
 0xa8e   : > { %v4588_v49 = vpop.f32.mrf.mxu0 }
 0xa8f   : > { %v4593_v50 = vmax.f32 %v4592_v48, 0.0 }
 0xa90   : > { %v4589_v51 = vpop.f32.mrf.mxu0 }
 0xa91   : > { %v4594_v52 = vpack.c.bf16 %v4593_v50, %v4593_v50 }
 0xa92   : > { %v4590_v53 = vpop.f32.mrf.mxu0 }
 0xa93   : > { %5685 = vmatmul.mubr.msk.bf16.vlgmr.msra.gmra.mxu1 %vm4628_vm8, %v4594_v52 }
 0xb53   : > { %v4666_v56 = vpop.f32.mrf.mxu1 }
 0xb54   : > { %v4667_v58 = vadd.f32 %v4666_v56, %v4603_v54 }
 0xb55   : > { %v5686_v59 = vpop.f32.mrf.mxu1 }
 0xb56   : > { %4673 = vst.msk [vmem:[%s434_s10] sm:$0x1] %vm4672_vm9, %v4667_v58 }
 0xb57   : > { %v4669_v60 = vpop.f32.mrf.mxu1 }
 0xb59   : > { %v5687_v62 = vpop.f32.mrf.mxu1 }
 0xb5a PF: > { %s26_s23 = sadd.s32 1, %s6200_s23  }
 0xb5b   : > { %p23_p1 = scmp.ge.s32.totalorder %s26_s23, 4  }
 0xb5d   :  { %25 = sbr.rel (!%p23_p1) target bundleno = 4 (0x4), region = 141 }
 0xb62   :  { %4707 = vsyncpa [#allocation4], 1 }
 0xb63   :  { %4709 = vsyncpa [#allocation4 + $0x1], 1 }

</bundles_post_ra>
